<compile_context>
chip_gen: v7x
topology: tpu7x:2x2x1
jax: 0.10.0
libtpu: 0.0.40
codegen_flags: <defaults>
</compile_context>

<pallas_src>
import math
from functools import partial

import jax
import jax.numpy as jnp
from jax.experimental import pallas as pl
from jax.experimental.pallas import tpu as pltpu


# ---------------------------------------------------------------------------
# Fused MBConv kernel. Activations are channel-major (C, H*W): the spatial
# axis (HW = 256) sits on the 128-lane axis (lane-dense loads/stores).
# ---------------------------------------------------------------------------

def _mbconv_kernel(x_ref, we_ref, wp_ref, cm_ref, co_ref, bsr_ref, o_ref,
                   *, K, H, W, pad_top, pad_left):
    HW = H * W
    KK = K * K
    f32 = jnp.float32
    Bt = x_ref.shape[0]            # images folded into this grid step (static)
    Csq = bsr_ref.shape[1]         # SE squeezed channels (static)

    # ---- unpack the two packed constant operands (static column slices) ----
    wdw    = cm_ref[:, 0:KK]                       # (Cmid, K*K) depthwise taps
    bn0_s  = cm_ref[:, KK + 0:KK + 1]              # (Cmid, 1)
    bn0_b  = cm_ref[:, KK + 1:KK + 2]
    bn1_s  = cm_ref[:, KK + 2:KK + 3]
    bn1_b  = cm_ref[:, KK + 3:KK + 4]
    b_se_x = cm_ref[:, KK + 4:KK + 5]
    w_se_r = cm_ref[:, KK + 5:KK + 5 + Csq]        # (Cmid, Csq)
    w_se_x = cm_ref[:, KK + 5 + Csq:KK + 5 + 2 * Csq]
    bn2_s  = co_ref[:, 0:1]                        # (Cout_pad, 1)
    bn2_b  = co_ref[:, 1:2]
    b_se_r = bsr_ref[...]                          # (1, Csq)

    # bf16 operands for the two 1x1-conv matmuls (f32 accumulation on MXU).
    we_bf = we_ref[...].astype(jnp.bfloat16)       # (Cmid, Cin_pad)
    wp_bf = wp_ref[...].astype(jnp.bfloat16)       # (Cout_pad, Cmid)

    # ---- per-tap shift amounts + validity masks, hoisted (built once) ------
    # pltpu.roll wraps circularly, so every tap needs a row AND column
    # validity mask for the border pixels (TF-SAME zero padding).
    # Row validity (0 <= r+dh < H) is expressed on the flat index directly:
    #   0 <= n + dh*W < HW  <=>  0 <= r+dh < H   (since 0 <= c < W).
    flat = jax.lax.broadcasted_iota(jnp.int32, (1, HW), 1)
    col = flat % W
    taps = []   # (shift, mask-or-None, tap column index)
    for kh in range(K):
        dh = kh - pad_top
        rmask = jnp.logical_and(flat + dh * W >= 0, flat + dh * W < HW)
        for kw in range(K):
            dw = kw - pad_left
            off = dh * W + dw
            shift = (-off) % HW            # rolled[n] = y[(n + off) mod HW]
            if dh == 0 and dw == 0:
                mask = None                # center tap: always valid
            else:
                cmask = jnp.logical_and(col + dw >= 0, col + dw < W)
                mask = jnp.logical_and(rmask, cmask).astype(f32)   # (1, HW)
            taps.append((shift, mask, kh * K + kw))

    inv_hw = 1.0 / HW

    # ---- process Bt images (statically unrolled; one grid step by default) --
    for b in range(Bt):
        x = x_ref[b]                                           # (Cin_pad, HW)

        # expand 1x1 conv (MXU, bf16 x bf16 -> f32) + folded BN0 + swish
        y = jnp.dot(we_bf, x.astype(jnp.bfloat16),
                    preferred_element_type=f32)                # (Cmid, HW)
        y = y * bn0_s + bn0_b
        y = y * jax.nn.sigmoid(y)

        # depthwise KxK conv, TF-SAME, stride 1: K*K XLU rolls + masked FMAs
        acc = jnp.zeros_like(y)
        for shift, mask, j in taps:
            w_col = wdw[:, j:j + 1]                            # (Cmid, 1)
            wm = w_col if mask is None else w_col * mask       # fold mask into tap weight
            rolled = pltpu.roll(y, shift=shift, axis=1) if shift else y
            acc = acc + rolled * wm
        y = acc * bn1_s + bn1_b
        y = y * jax.nn.sigmoid(y)

        # squeeze & excite (kept in f32)
        pooled = jnp.sum(y, axis=1, keepdims=True) * inv_hw               # (Cmid, 1)
        s = jnp.sum(w_se_r * pooled, axis=0, keepdims=True) + b_se_r      # (1, Csq)
        s = s * jax.nn.sigmoid(s)
        e = jnp.sum(w_se_x * s, axis=1, keepdims=True) + b_se_x           # (Cmid, 1)
        y = y * jax.nn.sigmoid(e)

        # project 1x1 conv (MXU) + folded BN2 + identity skip
        z = jnp.dot(wp_bf, y.astype(jnp.bfloat16),
                    preferred_element_type=f32)                # (Cout_pad, HW)
        o_ref[b] = z * bn2_s + bn2_b + x


# ---------------------------------------------------------------------------
# Wrapper: NCHW in / NCHW out, single pallas_call, grid over batch tiles
# ---------------------------------------------------------------------------

def mbconv_forward(x_nchw, params, *, kernel_size=3, stride=1, batch_tile=None):
    assert stride == 1, "id_skip residual variant implemented; stride must be 1"
    B, Cin, H, W = x_nchw.shape
    HW = H * W
    K = kernel_size
    assert K <= H and K <= W
    Cmid = params["w_expand"].shape[0]
    Cout = params["w_project"].shape[0]
    Csq = params["w_se_reduce"].shape[1]
    assert Cout == Cin, "identity skip requires input_filters == output_filters"

    # Batch folding: default = whole batch in ONE grid step (per-step pipeline
    # overhead dominates at this size).  Set batch_tile=B//2 on v7x to give
    # each TensorCore half the batch via the "parallel" grid axis.
    Bt = B if batch_tile is None else batch_tile
    assert B % Bt == 0

    # TF-SAME padding split (stride 1 -> total pad = K - 1 per spatial dim)
    pad_h = max((math.ceil(H / stride) - 1) * stride + K - H, 0)
    pad_w = max((math.ceil(W / stride) - 1) * stride + K - W, 0)
    pad_top, pad_left = pad_h // 2, pad_w // 2

    # Pad Cin/Cout to full 8-row f32 sublanes (unmasked vector loads/stores).
    Cpad = ((max(Cin, Cout) + 7) // 8) * 8

    # NCHW -> (B, C, H*W): free reshape; channel pad is a tiny wrapper-side op.
    x2 = x_nchw.reshape(B, Cin, HW).astype(jnp.float32)
    if Cpad != Cin:
        x2 = jnp.pad(x2, ((0, 0), (0, Cpad - Cin), (0, 0)))

    we = params["w_expand"].astype(jnp.float32)
    if Cpad != Cin:
        we = jnp.pad(we, ((0, 0), (0, Cpad - Cin)))
    wp = params["w_project"].astype(jnp.float32)
    bn2s, bn2b = params["bn2_scale"], params["bn2_bias"]
    if Cpad != Cout:
        wp = jnp.pad(wp, ((0, Cpad - Cout), (0, 0)))
        bn2s = jnp.pad(bn2s, ((0, Cpad - Cout), (0, 0)))
        bn2b = jnp.pad(bn2b, ((0, Cpad - Cout), (0, 0)))

    # Pack all per-Cmid constants into one operand, per-Cout constants into
    # another (fewer DMAs / double-buffer slots). Column layout must match
    # the static slices in the kernel.
    cm_pack = jnp.concatenate(
        [params["w_dw"],
         params["bn0_scale"], params["bn0_bias"],
         params["bn1_scale"], params["bn1_bias"],
         params["b_se_expand"],
         params["w_se_reduce"], params["w_se_expand"]],
        axis=1).astype(jnp.float32)                       # (Cmid, K*K + 5 + 2*Csq)
    co_pack = jnp.concatenate([bn2s, bn2b], axis=1).astype(jnp.float32)  # (Cpad, 2)
    b_se_r = params["b_se_reduce"].astype(jnp.float32)    # (1, Csq)

    ncol = K * K + 5 + 2 * Csq
    kernel = partial(_mbconv_kernel, K=K, H=H, W=W,
                     pad_top=pad_top, pad_left=pad_left)

    out = pl.pallas_call(
        kernel,
        out_shape=jax.ShapeDtypeStruct((B, Cpad, HW), jnp.float32),
        grid=(B // Bt,),
        in_specs=[
            pl.BlockSpec((Bt, Cpad, HW), lambda g: (g, 0, 0)),   # x (batch tile)
            pl.BlockSpec((Cmid, Cpad), lambda g: (0, 0)),        # w_expand
            pl.BlockSpec((Cpad, Cmid), lambda g: (0, 0)),        # w_project
            pl.BlockSpec((Cmid, ncol), lambda g: (0, 0)),        # packed Cmid consts
            pl.BlockSpec((Cpad, 2), lambda g: (0, 0)),           # packed Cout consts
            pl.BlockSpec((1, Csq), lambda g: (0, 0)),            # SE reduce bias
        ],
        out_specs=pl.BlockSpec((Bt, Cpad, HW), lambda g: (g, 0, 0)),
        compiler_params=pltpu.CompilerParams(
            dimension_semantics=("parallel",),
            vmem_limit_bytes=32 * 1024 * 1024),
    )(x2, we, wp, cm_pack, co_pack, b_se_r)

    return out[:, :Cout, :].reshape(B, Cout, H, W)


# ---------------------------------------------------------------------------
# Synthetic parameter init (inference-mode BN folded to scale/bias)
# ---------------------------------------------------------------------------

def init_params(key, cin, expand_ratio, kernel_size, se_ratio, cout, eps=1e-3):
    cmid = cin * expand_ratio
    csq = max(1, int(cin * se_ratio))
    ks = jax.random.split(key, 10)

    def folded_bn(k, c):
        kg, kb, km, kv = jax.random.split(k, 4)
        gamma = 1.0 + 0.1 * jax.random.normal(kg, (c,), jnp.float32)
        beta = 0.1 * jax.random.normal(kb, (c,), jnp.float32)
        mean = 0.1 * jax.random.normal(km, (c,), jnp.float32)
        var = jax.random.uniform(kv, (c,), jnp.float32, minval=0.5, maxval=1.5)
        scale = gamma * jax.lax.rsqrt(var + eps)
        bias = beta - mean * scale
        return scale.reshape(c, 1), bias.reshape(c, 1)

    p = {}
    p["w_expand"] = 0.3 * jax.random.normal(ks[0], (cmid, cin), jnp.float32)
    p["bn0_scale"], p["bn0_bias"] = folded_bn(ks[1], cmid)
    p["w_dw"] = 0.3 * jax.random.normal(ks[2], (cmid, kernel_size * kernel_size), jnp.float32)
    p["bn1_scale"], p["bn1_bias"] = folded_bn(ks[3], cmid)
    p["w_se_reduce"] = 0.3 * jax.random.normal(ks[4], (cmid, csq), jnp.float32)
    p["b_se_reduce"] = 0.1 * jax.random.normal(ks[5], (1, csq), jnp.float32)
    p["w_se_expand"] = 0.3 * jax.random.normal(ks[6], (cmid, csq), jnp.float32)
    p["b_se_expand"] = 0.1 * jax.random.normal(ks[7], (cmid, 1), jnp.float32)
    p["w_project"] = 0.3 * jax.random.normal(ks[8], (cout, cmid), jnp.float32)
    p["bn2_scale"], p["bn2_bias"] = folded_bn(ks[9], cout)
    return p


# ---------------------------------------------------------------------------
# Pure-JAX reference (mirrors the PyTorch forward, eval mode, full f32)
# ---------------------------------------------------------------------------

def reference_forward(x_nchw, params, *, kernel_size=3, stride=1):
    x = x_nchw.astype(jnp.float32)
    B, Cin, H, W = x.shape
    K = kernel_size
    hp = jax.lax.Precision.HIGHEST
    swish = lambda v: v * jax.nn.sigmoid(v)
    cvec = lambda v: v.reshape(1, -1, 1, 1)

    y = jnp.einsum("oc,bchw->bohw", params["w_expand"], x, precision=hp)
    y = swish(y * cvec(params["bn0_scale"]) + cvec(params["bn0_bias"]))

    pad_h = max((math.ceil(H / stride) - 1) * stride + K - H, 0)
    pad_w = max((math.ceil(W / stride) - 1) * stride + K - W, 0)
    yp = jnp.pad(y, ((0, 0), (0, 0),
                     (pad_h // 2, pad_h - pad_h // 2),
                     (pad_w // 2, pad_w - pad_w // 2)))
    Cmid = y.shape[1]
    acc = jnp.zeros_like(y)
    for kh in range(K):
        for kw in range(K):
            tap = params["w_dw"][:, kh * K + kw].reshape(1, Cmid, 1, 1)
            acc = acc + yp[:, :, kh:kh + H, kw:kw + W] * tap
    y = swish(acc * cvec(params["bn1_scale"]) + cvec(params["bn1_bias"]))

    pooled = jnp.mean(y, axis=(2, 3))                                   # (B, Cmid)
    s = jnp.dot(pooled, params["w_se_reduce"], precision=hp) + params["b_se_reduce"]
    s = swish(s)                                                        # (B, Csq)
    e = jnp.dot(s, params["w_se_expand"].T, precision=hp) \
        + params["b_se_expand"].reshape(1, -1)                          # (B, Cmid)
    y = y * jax.nn.sigmoid(e)[:, :, None, None]

    z = jnp.einsum("oc,bchw->bohw", params["w_project"], y, precision=hp)
    z = z * cvec(params["bn2_scale"]) + cvec(params["bn2_bias"]) + x
    return z


# ---------------------------------------------------------------------------

if __name__ == "__main__":
    B, Cin, H, W = 2, 4, 16, 16
    expand_ratio, kernel_size, stride, se_ratio = 6, 3, 1, 0.25
    Cout = Cin   # id_skip + stride 1 + equal filters -> residual add active

    key = jax.random.PRNGKey(0)
    kx, kp = jax.random.split(key)
    x = jax.random.normal(kx, (B, Cin, H, W), jnp.float32)
    params = init_params(kp, Cin, expand_ratio, kernel_size, se_ratio, Cout)

    fwd = jax.jit(partial(mbconv_forward, kernel_size=kernel_size, stride=stride))
    out = jax.block_until_ready(fwd(x, params))
    ref = jax.block_until_ready(
        reference_forward(x, params, kernel_size=kernel_size, stride=stride))

    assert out.shape == (B, Cout, H, W)
    max_err = float(jnp.max(jnp.abs(out - ref)))
    ref_scale = float(jnp.max(jnp.abs(ref)))
    # Tolerance loosened vs. the f32 1e-3 bound because the two 1x1-conv
    # matmuls now use bf16 operands (single-pass MXU, f32 accumulation) per
    # the performance review; the reference is full-precision f32.
    assert max_err <= 2e-2 * max(1.0, ref_scale), \
        f"mismatch vs reference: {max_err} (ref scale {ref_scale})"
    print("KERNEL_OK")
</pallas_src>

<mosaic_0001>
module attributes {stable_mosaic.version = 11 : i64} {
  func.func @_mbconv_kernel(%arg0: i32, %arg1: memref<2x8x256xf32, #tpu.memory_space<vmem>>, %arg2: memref<24x8xf32, #tpu.memory_space<vmem>>, %arg3: memref<8x24xf32, #tpu.memory_space<vmem>>, %arg4: memref<24x16xf32, #tpu.memory_space<vmem>>, %arg5: memref<8x2xf32, #tpu.memory_space<vmem>>, %arg6: memref<1x1xf32, #tpu.memory_space<vmem>>, %arg7: memref<2x8x256xf32, #tpu.memory_space<vmem>>) attributes {dimension_semantics = [#tpu.dimension_semantics<parallel>], iteration_bounds = array<i64: 1>, scalar_prefetch = 0 : i64, scratch_operands = 0 : i64, tpu.core_type = #tpu.core_type<tc>, window_params = [{transform_indices = @transform_0, window_bounds = array<i64: 2, 8, 256>}, {pipeline_mode = #tpu.pipeline_mode<synchronous>, transform_indices = @transform_1, window_bounds = array<i64: 24, 8>}, {pipeline_mode = #tpu.pipeline_mode<synchronous>, transform_indices = @transform_2, window_bounds = array<i64: 8, 24>}, {pipeline_mode = #tpu.pipeline_mode<synchronous>, transform_indices = @transform_3, window_bounds = array<i64: 24, 16>}, {pipeline_mode = #tpu.pipeline_mode<synchronous>, transform_indices = @transform_4, window_bounds = array<i64: 8, 2>}, {pipeline_mode = #tpu.pipeline_mode<synchronous>, transform_indices = @transform_5, window_bounds = array<i64: 1, 1>}, {transform_indices = @transform_6, window_bounds = array<i64: 2, 8, 256>}]} {
    %c0 = arith.constant 0 : index
    %c0_0 = arith.constant 0 : index
    %0 = vector.load %arg4[%c0, %c0_0] : memref<24x16xf32, #tpu.memory_space<vmem>>, vector<24x9xf32>
    %c0_1 = arith.constant 0 : index
    %c9 = arith.constant 9 : index
    %1 = vector.load %arg4[%c0_1, %c9] : memref<24x16xf32, #tpu.memory_space<vmem>>, vector<24x1xf32>
    %c0_2 = arith.constant 0 : index
    %c10 = arith.constant 10 : index
    %2 = vector.load %arg4[%c0_2, %c10] : memref<24x16xf32, #tpu.memory_space<vmem>>, vector<24x1xf32>
    %c0_3 = arith.constant 0 : index
    %c11 = arith.constant 11 : index
    %3 = vector.load %arg4[%c0_3, %c11] : memref<24x16xf32, #tpu.memory_space<vmem>>, vector<24x1xf32>
    %c0_4 = arith.constant 0 : index
    %c12 = arith.constant 12 : index
    %4 = vector.load %arg4[%c0_4, %c12] : memref<24x16xf32, #tpu.memory_space<vmem>>, vector<24x1xf32>
    %c0_5 = arith.constant 0 : index
    %c13 = arith.constant 13 : index
    %5 = vector.load %arg4[%c0_5, %c13] : memref<24x16xf32, #tpu.memory_space<vmem>>, vector<24x1xf32>
    %c0_6 = arith.constant 0 : index
    %c14 = arith.constant 14 : index
    %6 = vector.load %arg4[%c0_6, %c14] : memref<24x16xf32, #tpu.memory_space<vmem>>, vector<24x1xf32>
    %c0_7 = arith.constant 0 : index
    %c15 = arith.constant 15 : index
    %7 = vector.load %arg4[%c0_7, %c15] : memref<24x16xf32, #tpu.memory_space<vmem>>, vector<24x1xf32>
    %c0_8 = arith.constant 0 : index
    %c0_9 = arith.constant 0 : index
    %8 = vector.load %arg5[%c0_8, %c0_9] : memref<8x2xf32, #tpu.memory_space<vmem>>, vector<8x1xf32>
    %c0_10 = arith.constant 0 : index
    %c1 = arith.constant 1 : index
    %9 = vector.load %arg5[%c0_10, %c1] : memref<8x2xf32, #tpu.memory_space<vmem>>, vector<8x1xf32>
    %c0_11 = arith.constant 0 : index
    %c0_12 = arith.constant 0 : index
    %10 = vector.load %arg6[%c0_11, %c0_12] : memref<1x1xf32, #tpu.memory_space<vmem>>, vector<1x1xf32>
    %c0_13 = arith.constant 0 : index
    %c0_14 = arith.constant 0 : index
    %11 = vector.load %arg2[%c0_13, %c0_14] : memref<24x8xf32, #tpu.memory_space<vmem>>, vector<24x8xf32>
    %12 = arith.truncf %11 : vector<24x8xf32> to vector<24x8xbf16>
    %c0_15 = arith.constant 0 : index
    %c0_16 = arith.constant 0 : index
    %13 = vector.load %arg3[%c0_15, %c0_16] : memref<8x24xf32, #tpu.memory_space<vmem>>, vector<8x24xf32>
    %14 = arith.truncf %13 : vector<8x24xf32> to vector<8x24xbf16>
    %15 = tpu.iota {dimensions = array<i32: 1>} : vector<1x256xi32>
    %c16_i32 = arith.constant 16 : i32
    %c0_i32 = arith.constant 0 : i32
    %16 = arith.cmpi eq, %c16_i32, %c0_i32 : i32
    %c1_i32 = arith.constant 1 : i32
    %17 = arith.select %16, %c1_i32, %c16_i32 : i32
    %18 = vector.broadcast %17 : i32 to vector<1x256xi32>
    %19 = arith.remsi %15, %18 : vector<1x256xi32>
    %c0_i32_17 = arith.constant 0 : i32
    %20 = vector.broadcast %c0_i32_17 : i32 to vector<1x256xi32>
    %21 = arith.cmpi ne, %19, %20 : vector<1x256xi32>
    %c0_i32_18 = arith.constant 0 : i32
    %22 = vector.broadcast %c0_i32_18 : i32 to vector<1x256xi32>
    %23 = arith.cmpi slt, %19, %22 : vector<1x256xi32>
    %c0_i32_19 = arith.constant 0 : i32
    %24 = arith.cmpi slt, %17, %c0_i32_19 : i32
    %25 = vector.broadcast %24 : i1 to vector<1x256xi1>
    %26 = vector.broadcast %25 : vector<1x256xi1> to vector<1x256xi1>
    %27 = arith.xori %23, %26 : vector<1x256xi1>
    %28 = arith.andi %27, %21 : vector<1x256xi1>
    %29 = vector.broadcast %17 : i32 to vector<1x256xi32>
    %30 = arith.addi %19, %29 : vector<1x256xi32>
    %31 = arith.select %28, %30, %19 : vector<1x256xi1>, vector<1x256xi32>
    %c-16_i32 = arith.constant -16 : i32
    %32 = vector.broadcast %c-16_i32 : i32 to vector<1x256xi32>
    %33 = arith.addi %15, %32 : vector<1x256xi32>
    %c0_i32_20 = arith.constant 0 : i32
    %34 = vector.broadcast %c0_i32_20 : i32 to vector<1x256xi32>
    %35 = arith.cmpi sge, %33, %34 : vector<1x256xi32>
    %c-16_i32_21 = arith.constant -16 : i32
    %36 = vector.broadcast %c-16_i32_21 : i32 to vector<1x256xi32>
    %37 = arith.addi %15, %36 : vector<1x256xi32>
    %c256_i32 = arith.constant 256 : i32
    %38 = vector.broadcast %c256_i32 : i32 to vector<1x256xi32>
    %39 = arith.cmpi slt, %37, %38 : vector<1x256xi32>
    %40 = arith.andi %35, %39 : vector<1x256xi1>
    %c-1_i32 = arith.constant -1 : i32
    %41 = vector.broadcast %c-1_i32 : i32 to vector<1x256xi32>
    %42 = arith.addi %31, %41 : vector<1x256xi32>
    %c0_i32_22 = arith.constant 0 : i32
    %43 = vector.broadcast %c0_i32_22 : i32 to vector<1x256xi32>
    %44 = arith.cmpi sge, %42, %43 : vector<1x256xi32>
    %c-1_i32_23 = arith.constant -1 : i32
    %45 = vector.broadcast %c-1_i32_23 : i32 to vector<1x256xi32>
    %46 = arith.addi %31, %45 : vector<1x256xi32>
    %c16_i32_24 = arith.constant 16 : i32
    %47 = vector.broadcast %c16_i32_24 : i32 to vector<1x256xi32>
    %48 = arith.cmpi slt, %46, %47 : vector<1x256xi32>
    %49 = arith.andi %44, %48 : vector<1x256xi1>
    %50 = arith.andi %40, %49 : vector<1x256xi1>
    %51 = arith.extui %50 : vector<1x256xi1> to vector<1x256xi32>
    %52 = arith.sitofp %51 : vector<1x256xi32> to vector<1x256xf32>
    %c0_i32_25 = arith.constant 0 : i32
    %53 = vector.broadcast %c0_i32_25 : i32 to vector<1x256xi32>
    %54 = arith.addi %31, %53 : vector<1x256xi32>
    %c0_i32_26 = arith.constant 0 : i32
    %55 = vector.broadcast %c0_i32_26 : i32 to vector<1x256xi32>
    %56 = arith.cmpi sge, %54, %55 : vector<1x256xi32>
    %c0_i32_27 = arith.constant 0 : i32
    %57 = vector.broadcast %c0_i32_27 : i32 to vector<1x256xi32>
    %58 = arith.addi %31, %57 : vector<1x256xi32>
    %c16_i32_28 = arith.constant 16 : i32
    %59 = vector.broadcast %c16_i32_28 : i32 to vector<1x256xi32>
    %60 = arith.cmpi slt, %58, %59 : vector<1x256xi32>
    %61 = arith.andi %56, %60 : vector<1x256xi1>
    %62 = arith.andi %40, %61 : vector<1x256xi1>
    %63 = arith.extui %62 : vector<1x256xi1> to vector<1x256xi32>
    %64 = arith.sitofp %63 : vector<1x256xi32> to vector<1x256xf32>
    %c1_i32_29 = arith.constant 1 : i32
    %65 = vector.broadcast %c1_i32_29 : i32 to vector<1x256xi32>
    %66 = arith.addi %31, %65 : vector<1x256xi32>
    %c0_i32_30 = arith.constant 0 : i32
    %67 = vector.broadcast %c0_i32_30 : i32 to vector<1x256xi32>
    %68 = arith.cmpi sge, %66, %67 : vector<1x256xi32>
    %c1_i32_31 = arith.constant 1 : i32
    %69 = vector.broadcast %c1_i32_31 : i32 to vector<1x256xi32>
    %70 = arith.addi %31, %69 : vector<1x256xi32>
    %c16_i32_32 = arith.constant 16 : i32
    %71 = vector.broadcast %c16_i32_32 : i32 to vector<1x256xi32>
    %72 = arith.cmpi slt, %70, %71 : vector<1x256xi32>
    %73 = arith.andi %68, %72 : vector<1x256xi1>
    %74 = arith.andi %40, %73 : vector<1x256xi1>
    %75 = arith.extui %74 : vector<1x256xi1> to vector<1x256xi32>
    %76 = arith.sitofp %75 : vector<1x256xi32> to vector<1x256xf32>
    %c0_i32_33 = arith.constant 0 : i32
    %77 = vector.broadcast %c0_i32_33 : i32 to vector<1x256xi32>
    %78 = arith.addi %15, %77 : vector<1x256xi32>
    %c0_i32_34 = arith.constant 0 : i32
    %79 = vector.broadcast %c0_i32_34 : i32 to vector<1x256xi32>
    %80 = arith.cmpi sge, %78, %79 : vector<1x256xi32>
    %c0_i32_35 = arith.constant 0 : i32
    %81 = vector.broadcast %c0_i32_35 : i32 to vector<1x256xi32>
    %82 = arith.addi %15, %81 : vector<1x256xi32>
    %c256_i32_36 = arith.constant 256 : i32
    %83 = vector.broadcast %c256_i32_36 : i32 to vector<1x256xi32>
    %84 = arith.cmpi slt, %82, %83 : vector<1x256xi32>
    %85 = arith.andi %80, %84 : vector<1x256xi1>
    %c-1_i32_37 = arith.constant -1 : i32
    %86 = vector.broadcast %c-1_i32_37 : i32 to vector<1x256xi32>
    %87 = arith.addi %31, %86 : vector<1x256xi32>
    %c0_i32_38 = arith.constant 0 : i32
    %88 = vector.broadcast %c0_i32_38 : i32 to vector<1x256xi32>
    %89 = arith.cmpi sge, %87, %88 : vector<1x256xi32>
    %c-1_i32_39 = arith.constant -1 : i32
    %90 = vector.broadcast %c-1_i32_39 : i32 to vector<1x256xi32>
    %91 = arith.addi %31, %90 : vector<1x256xi32>
    %c16_i32_40 = arith.constant 16 : i32
    %92 = vector.broadcast %c16_i32_40 : i32 to vector<1x256xi32>
    %93 = arith.cmpi slt, %91, %92 : vector<1x256xi32>
    %94 = arith.andi %89, %93 : vector<1x256xi1>
    %95 = arith.andi %85, %94 : vector<1x256xi1>
    %96 = arith.extui %95 : vector<1x256xi1> to vector<1x256xi32>
    %97 = arith.sitofp %96 : vector<1x256xi32> to vector<1x256xf32>
    %c1_i32_41 = arith.constant 1 : i32
    %98 = vector.broadcast %c1_i32_41 : i32 to vector<1x256xi32>
    %99 = arith.addi %31, %98 : vector<1x256xi32>
    %c0_i32_42 = arith.constant 0 : i32
    %100 = vector.broadcast %c0_i32_42 : i32 to vector<1x256xi32>
    %101 = arith.cmpi sge, %99, %100 : vector<1x256xi32>
    %c1_i32_43 = arith.constant 1 : i32
    %102 = vector.broadcast %c1_i32_43 : i32 to vector<1x256xi32>
    %103 = arith.addi %31, %102 : vector<1x256xi32>
    %c16_i32_44 = arith.constant 16 : i32
    %104 = vector.broadcast %c16_i32_44 : i32 to vector<1x256xi32>
    %105 = arith.cmpi slt, %103, %104 : vector<1x256xi32>
    %106 = arith.andi %101, %105 : vector<1x256xi1>
    %107 = arith.andi %85, %106 : vector<1x256xi1>
    %108 = arith.extui %107 : vector<1x256xi1> to vector<1x256xi32>
    %109 = arith.sitofp %108 : vector<1x256xi32> to vector<1x256xf32>
    %c16_i32_45 = arith.constant 16 : i32
    %110 = vector.broadcast %c16_i32_45 : i32 to vector<1x256xi32>
    %111 = arith.addi %15, %110 : vector<1x256xi32>
    %c0_i32_46 = arith.constant 0 : i32
    %112 = vector.broadcast %c0_i32_46 : i32 to vector<1x256xi32>
    %113 = arith.cmpi sge, %111, %112 : vector<1x256xi32>
    %c16_i32_47 = arith.constant 16 : i32
    %114 = vector.broadcast %c16_i32_47 : i32 to vector<1x256xi32>
    %115 = arith.addi %15, %114 : vector<1x256xi32>
    %c256_i32_48 = arith.constant 256 : i32
    %116 = vector.broadcast %c256_i32_48 : i32 to vector<1x256xi32>
    %117 = arith.cmpi slt, %115, %116 : vector<1x256xi32>
    %118 = arith.andi %113, %117 : vector<1x256xi1>
    %c-1_i32_49 = arith.constant -1 : i32
    %119 = vector.broadcast %c-1_i32_49 : i32 to vector<1x256xi32>
    %120 = arith.addi %31, %119 : vector<1x256xi32>
    %c0_i32_50 = arith.constant 0 : i32
    %121 = vector.broadcast %c0_i32_50 : i32 to vector<1x256xi32>
    %122 = arith.cmpi sge, %120, %121 : vector<1x256xi32>
    %c-1_i32_51 = arith.constant -1 : i32
    %123 = vector.broadcast %c-1_i32_51 : i32 to vector<1x256xi32>
    %124 = arith.addi %31, %123 : vector<1x256xi32>
    %c16_i32_52 = arith.constant 16 : i32
    %125 = vector.broadcast %c16_i32_52 : i32 to vector<1x256xi32>
    %126 = arith.cmpi slt, %124, %125 : vector<1x256xi32>
    %127 = arith.andi %122, %126 : vector<1x256xi1>
    %128 = arith.andi %118, %127 : vector<1x256xi1>
    %129 = arith.extui %128 : vector<1x256xi1> to vector<1x256xi32>
    %130 = arith.sitofp %129 : vector<1x256xi32> to vector<1x256xf32>
    %c0_i32_53 = arith.constant 0 : i32
    %131 = vector.broadcast %c0_i32_53 : i32 to vector<1x256xi32>
    %132 = arith.addi %31, %131 : vector<1x256xi32>
    %c0_i32_54 = arith.constant 0 : i32
    %133 = vector.broadcast %c0_i32_54 : i32 to vector<1x256xi32>
    %134 = arith.cmpi sge, %132, %133 : vector<1x256xi32>
    %c0_i32_55 = arith.constant 0 : i32
    %135 = vector.broadcast %c0_i32_55 : i32 to vector<1x256xi32>
    %136 = arith.addi %31, %135 : vector<1x256xi32>
    %c16_i32_56 = arith.constant 16 : i32
    %137 = vector.broadcast %c16_i32_56 : i32 to vector<1x256xi32>
    %138 = arith.cmpi slt, %136, %137 : vector<1x256xi32>
    %139 = arith.andi %134, %138 : vector<1x256xi1>
    %140 = arith.andi %118, %139 : vector<1x256xi1>
    %141 = arith.extui %140 : vector<1x256xi1> to vector<1x256xi32>
    %142 = arith.sitofp %141 : vector<1x256xi32> to vector<1x256xf32>
    %c1_i32_57 = arith.constant 1 : i32
    %143 = vector.broadcast %c1_i32_57 : i32 to vector<1x256xi32>
    %144 = arith.addi %31, %143 : vector<1x256xi32>
    %c0_i32_58 = arith.constant 0 : i32
    %145 = vector.broadcast %c0_i32_58 : i32 to vector<1x256xi32>
    %146 = arith.cmpi sge, %144, %145 : vector<1x256xi32>
    %c1_i32_59 = arith.constant 1 : i32
    %147 = vector.broadcast %c1_i32_59 : i32 to vector<1x256xi32>
    %148 = arith.addi %31, %147 : vector<1x256xi32>
    %c16_i32_60 = arith.constant 16 : i32
    %149 = vector.broadcast %c16_i32_60 : i32 to vector<1x256xi32>
    %150 = arith.cmpi slt, %148, %149 : vector<1x256xi32>
    %151 = arith.andi %146, %150 : vector<1x256xi1>
    %152 = arith.andi %118, %151 : vector<1x256xi1>
    %153 = arith.extui %152 : vector<1x256xi1> to vector<1x256xi32>
    %154 = arith.sitofp %153 : vector<1x256xi32> to vector<1x256xf32>
    %c0_61 = arith.constant 0 : index
    %c0_62 = arith.constant 0 : index
    %c0_63 = arith.constant 0 : index
    %155 = vector.load %arg1[%c0_61, %c0_62, %c0_63] : memref<2x8x256xf32, #tpu.memory_space<vmem>>, vector<1x8x256xf32>
    %156 = vector.shape_cast %155 : vector<1x8x256xf32> to vector<8x256xf32>
    %157 = arith.truncf %156 : vector<8x256xf32> to vector<8x256xbf16>
    %cst = arith.constant dense<0.000000e+00> : vector<24x256xf32>
    %158 = tpu.matmul %12, %157, %cst {dimension_numbers = #tpu.dot_dimension_numbers<[1], [0], [0], [1], [0, 0, 1, 1], [], []>} : vector<24x8xbf16>, vector<8x256xbf16>, vector<24x256xf32> -> vector<24x256xf32>
    %159 = vector.broadcast %1 : vector<24x1xf32> to vector<24x256xf32>
    %160 = arith.mulf %158, %159 : vector<24x256xf32>
    %161 = vector.broadcast %2 : vector<24x1xf32> to vector<24x256xf32>
    %162 = arith.addf %160, %161 : vector<24x256xf32>
    %163 = arith.negf %162 : vector<24x256xf32>
    %164 = math.exp %163 : vector<24x256xf32>
    %cst_64 = arith.constant 1.000000e+00 : f32
    %165 = vector.broadcast %cst_64 : f32 to vector<24x256xf32>
    %166 = arith.addf %165, %164 : vector<24x256xf32>
    %167 = arith.divf %165, %166 : vector<24x256xf32>
    %168 = arith.mulf %162, %167 : vector<24x256xf32>
    %cst_65 = arith.constant 0.000000e+00 : f32
    %169 = vector.broadcast %cst_65 : f32 to vector<24x256xf32>
    %170 = vector.extract_strided_slice %0 {offsets = [0, 0], sizes = [24, 1], strides = [1, 1]} : vector<24x9xf32> to vector<24x1xf32>
    %171 = vector.broadcast %170 : vector<24x1xf32> to vector<24x256xf32>
    %172 = vector.broadcast %52 : vector<1x256xf32> to vector<24x256xf32>
    %173 = arith.mulf %171, %172 : vector<24x256xf32>
    %c17_i32 = arith.constant 17 : i32
    %174 = tpu.dynamic_rotate %168 by %c17_i32 dim 1 : vector<24x256xf32>, i32 -> vector<24x256xf32>
    %175 = arith.mulf %174, %173 : vector<24x256xf32>
    %176 = arith.addf %169, %175 : vector<24x256xf32>
    %177 = vector.extract_strided_slice %0 {offsets = [0, 1], sizes = [24, 1], strides = [1, 1]} : vector<24x9xf32> to vector<24x1xf32>
    %178 = vector.broadcast %177 : vector<24x1xf32> to vector<24x256xf32>
    %179 = vector.broadcast %64 : vector<1x256xf32> to vector<24x256xf32>
    %180 = arith.mulf %178, %179 : vector<24x256xf32>
    %c16_i32_66 = arith.constant 16 : i32
    %181 = tpu.dynamic_rotate %168 by %c16_i32_66 dim 1 : vector<24x256xf32>, i32 -> vector<24x256xf32>
    %182 = arith.mulf %181, %180 : vector<24x256xf32>
    %183 = arith.addf %176, %182 : vector<24x256xf32>
    %184 = vector.extract_strided_slice %0 {offsets = [0, 2], sizes = [24, 1], strides = [1, 1]} : vector<24x9xf32> to vector<24x1xf32>
    %185 = vector.broadcast %184 : vector<24x1xf32> to vector<24x256xf32>
    %186 = vector.broadcast %76 : vector<1x256xf32> to vector<24x256xf32>
    %187 = arith.mulf %185, %186 : vector<24x256xf32>
    %c15_i32 = arith.constant 15 : i32
    %188 = tpu.dynamic_rotate %168 by %c15_i32 dim 1 : vector<24x256xf32>, i32 -> vector<24x256xf32>
    %189 = arith.mulf %188, %187 : vector<24x256xf32>
    %190 = arith.addf %183, %189 : vector<24x256xf32>
    %191 = vector.extract_strided_slice %0 {offsets = [0, 3], sizes = [24, 1], strides = [1, 1]} : vector<24x9xf32> to vector<24x1xf32>
    %192 = vector.broadcast %191 : vector<24x1xf32> to vector<24x256xf32>
    %193 = vector.broadcast %97 : vector<1x256xf32> to vector<24x256xf32>
    %194 = arith.mulf %192, %193 : vector<24x256xf32>
    %c1_i32_67 = arith.constant 1 : i32
    %195 = tpu.dynamic_rotate %168 by %c1_i32_67 dim 1 : vector<24x256xf32>, i32 -> vector<24x256xf32>
    %196 = arith.mulf %195, %194 : vector<24x256xf32>
    %197 = arith.addf %190, %196 : vector<24x256xf32>
    %198 = vector.extract_strided_slice %0 {offsets = [0, 4], sizes = [24, 1], strides = [1, 1]} : vector<24x9xf32> to vector<24x1xf32>
    %199 = vector.broadcast %198 : vector<24x1xf32> to vector<24x256xf32>
    %200 = arith.mulf %168, %199 : vector<24x256xf32>
    %201 = arith.addf %197, %200 : vector<24x256xf32>
    %202 = vector.extract_strided_slice %0 {offsets = [0, 5], sizes = [24, 1], strides = [1, 1]} : vector<24x9xf32> to vector<24x1xf32>
    %203 = vector.broadcast %202 : vector<24x1xf32> to vector<24x256xf32>
    %204 = vector.broadcast %109 : vector<1x256xf32> to vector<24x256xf32>
    %205 = arith.mulf %203, %204 : vector<24x256xf32>
    %c255_i32 = arith.constant 255 : i32
    %206 = tpu.dynamic_rotate %168 by %c255_i32 dim 1 : vector<24x256xf32>, i32 -> vector<24x256xf32>
    %207 = arith.mulf %206, %205 : vector<24x256xf32>
    %208 = arith.addf %201, %207 : vector<24x256xf32>
    %209 = vector.extract_strided_slice %0 {offsets = [0, 6], sizes = [24, 1], strides = [1, 1]} : vector<24x9xf32> to vector<24x1xf32>
    %210 = vector.broadcast %209 : vector<24x1xf32> to vector<24x256xf32>
    %211 = vector.broadcast %130 : vector<1x256xf32> to vector<24x256xf32>
    %212 = arith.mulf %210, %211 : vector<24x256xf32>
    %c241_i32 = arith.constant 241 : i32
    %213 = tpu.dynamic_rotate %168 by %c241_i32 dim 1 : vector<24x256xf32>, i32 -> vector<24x256xf32>
    %214 = arith.mulf %213, %212 : vector<24x256xf32>
    %215 = arith.addf %208, %214 : vector<24x256xf32>
    %216 = vector.extract_strided_slice %0 {offsets = [0, 7], sizes = [24, 1], strides = [1, 1]} : vector<24x9xf32> to vector<24x1xf32>
    %217 = vector.broadcast %216 : vector<24x1xf32> to vector<24x256xf32>
    %218 = vector.broadcast %142 : vector<1x256xf32> to vector<24x256xf32>
    %219 = arith.mulf %217, %218 : vector<24x256xf32>
    %c240_i32 = arith.constant 240 : i32
    %220 = tpu.dynamic_rotate %168 by %c240_i32 dim 1 : vector<24x256xf32>, i32 -> vector<24x256xf32>
    %221 = arith.mulf %220, %219 : vector<24x256xf32>
    %222 = arith.addf %215, %221 : vector<24x256xf32>
    %223 = vector.extract_strided_slice %0 {offsets = [0, 8], sizes = [24, 1], strides = [1, 1]} : vector<24x9xf32> to vector<24x1xf32>
    %224 = vector.broadcast %223 : vector<24x1xf32> to vector<24x256xf32>
    %225 = vector.broadcast %154 : vector<1x256xf32> to vector<24x256xf32>
    %226 = arith.mulf %224, %225 : vector<24x256xf32>
    %c239_i32 = arith.constant 239 : i32
    %227 = tpu.dynamic_rotate %168 by %c239_i32 dim 1 : vector<24x256xf32>, i32 -> vector<24x256xf32>
    %228 = arith.mulf %227, %226 : vector<24x256xf32>
    %229 = arith.addf %222, %228 : vector<24x256xf32>
    %230 = vector.broadcast %3 : vector<24x1xf32> to vector<24x256xf32>
    %231 = arith.mulf %229, %230 : vector<24x256xf32>
    %232 = vector.broadcast %4 : vector<24x1xf32> to vector<24x256xf32>
    %233 = arith.addf %231, %232 : vector<24x256xf32>
    %234 = arith.negf %233 : vector<24x256xf32>
    %235 = math.exp %234 : vector<24x256xf32>
    %cst_68 = arith.constant 1.000000e+00 : f32
    %236 = vector.broadcast %cst_68 : f32 to vector<24x256xf32>
    %237 = arith.addf %236, %235 : vector<24x256xf32>
    %238 = arith.divf %236, %237 : vector<24x256xf32>
    %239 = arith.mulf %233, %238 : vector<24x256xf32>
    %cst_69 = arith.constant dense<0.000000e+00> : vector<24xf32>
    %240 = vector.multi_reduction <add>, %239, %cst_69 [1] : vector<24x256xf32> to vector<24xf32>
    %241 = vector.shape_cast %240 : vector<24xf32> to vector<24x1xf32>
    %cst_70 = arith.constant 3.906250e-03 : f32
    %242 = vector.broadcast %cst_70 : f32 to vector<24x1xf32>
    %243 = arith.mulf %241, %242 : vector<24x1xf32>
    %244 = arith.mulf %6, %243 : vector<24x1xf32>
    %cst_71 = arith.constant dense<0.000000e+00> : vector<1xf32>
    %245 = vector.multi_reduction <add>, %244, %cst_71 [0] : vector<24x1xf32> to vector<1xf32>
    %246 = vector.shape_cast %245 : vector<1xf32> to vector<1x1xf32>
    %247 = arith.addf %246, %10 : vector<1x1xf32>
    %248 = arith.negf %247 : vector<1x1xf32>
    %249 = math.exp %248 : vector<1x1xf32>
    %cst_72 = arith.constant 1.000000e+00 : f32
    %250 = vector.broadcast %cst_72 : f32 to vector<1x1xf32>
    %251 = arith.addf %250, %249 : vector<1x1xf32>
    %252 = arith.divf %250, %251 : vector<1x1xf32>
    %253 = arith.mulf %247, %252 : vector<1x1xf32>
    %254 = vector.broadcast %253 : vector<1x1xf32> to vector<24x1xf32>
    %255 = arith.mulf %7, %254 : vector<24x1xf32>
    %cst_73 = arith.constant dense<0.000000e+00> : vector<24xf32>
    %256 = vector.multi_reduction <add>, %255, %cst_73 [1] : vector<24x1xf32> to vector<24xf32>
    %257 = vector.shape_cast %256 : vector<24xf32> to vector<24x1xf32>
    %258 = arith.addf %257, %5 : vector<24x1xf32>
    %259 = arith.negf %258 : vector<24x1xf32>
    %260 = math.exp %259 : vector<24x1xf32>
    %cst_74 = arith.constant 1.000000e+00 : f32
    %261 = vector.broadcast %cst_74 : f32 to vector<24x1xf32>
    %262 = arith.addf %261, %260 : vector<24x1xf32>
    %263 = arith.divf %261, %262 : vector<24x1xf32>
    %264 = vector.broadcast %263 : vector<24x1xf32> to vector<24x256xf32>
    %265 = arith.mulf %239, %264 : vector<24x256xf32>
    %266 = arith.truncf %265 : vector<24x256xf32> to vector<24x256xbf16>
    %cst_75 = arith.constant dense<0.000000e+00> : vector<8x256xf32>
    %267 = tpu.matmul %14, %266, %cst_75 {dimension_numbers = #tpu.dot_dimension_numbers<[1], [0], [0], [1], [0, 0, 1, 1], [], []>} : vector<8x24xbf16>, vector<24x256xbf16>, vector<8x256xf32> -> vector<8x256xf32>
    %268 = vector.broadcast %8 : vector<8x1xf32> to vector<8x256xf32>
    %269 = arith.mulf %267, %268 : vector<8x256xf32>
    %270 = vector.broadcast %9 : vector<8x1xf32> to vector<8x256xf32>
    %271 = arith.addf %269, %270 : vector<8x256xf32>
    %272 = arith.addf %271, %156 : vector<8x256xf32>
    %c0_76 = arith.constant 0 : index
    %c0_77 = arith.constant 0 : index
    %c0_78 = arith.constant 0 : index
    %273 = vector.load %arg7[%c0_76, %c0_77, %c0_78] : memref<2x8x256xf32, #tpu.memory_space<vmem>>, vector<1x8x256xf32>
    %274 = vector.shape_cast %273 : vector<1x8x256xf32> to vector<8x256xf32>
    %275 = vector.shape_cast %272 : vector<8x256xf32> to vector<1x8x256xf32>
    tpu.vector_store %arg7[%c0_76, %c0_77, %c0_78], %275 {strides = array<i32>} : memref<2x8x256xf32, #tpu.memory_space<vmem>>, vector<1x8x256xf32>,
    %c1_79 = arith.constant 1 : index
    %c0_80 = arith.constant 0 : index
    %c0_81 = arith.constant 0 : index
    %276 = vector.load %arg1[%c1_79, %c0_80, %c0_81] : memref<2x8x256xf32, #tpu.memory_space<vmem>>, vector<1x8x256xf32>
    %277 = vector.shape_cast %276 : vector<1x8x256xf32> to vector<8x256xf32>
    %278 = arith.truncf %277 : vector<8x256xf32> to vector<8x256xbf16>
    %cst_82 = arith.constant dense<0.000000e+00> : vector<24x256xf32>
    %279 = tpu.matmul %12, %278, %cst_82 {dimension_numbers = #tpu.dot_dimension_numbers<[1], [0], [0], [1], [0, 0, 1, 1], [], []>} : vector<24x8xbf16>, vector<8x256xbf16>, vector<24x256xf32> -> vector<24x256xf32>
    %280 = vector.broadcast %1 : vector<24x1xf32> to vector<24x256xf32>
    %281 = arith.mulf %279, %280 : vector<24x256xf32>
    %282 = vector.broadcast %2 : vector<24x1xf32> to vector<24x256xf32>
    %283 = arith.addf %281, %282 : vector<24x256xf32>
    %284 = arith.negf %283 : vector<24x256xf32>
    %285 = math.exp %284 : vector<24x256xf32>
    %cst_83 = arith.constant 1.000000e+00 : f32
    %286 = vector.broadcast %cst_83 : f32 to vector<24x256xf32>
    %287 = arith.addf %286, %285 : vector<24x256xf32>
    %288 = arith.divf %286, %287 : vector<24x256xf32>
    %289 = arith.mulf %283, %288 : vector<24x256xf32>
    %cst_84 = arith.constant 0.000000e+00 : f32
    %290 = vector.broadcast %cst_84 : f32 to vector<24x256xf32>
    %291 = vector.extract_strided_slice %0 {offsets = [0, 0], sizes = [24, 1], strides = [1, 1]} : vector<24x9xf32> to vector<24x1xf32>
    %292 = vector.broadcast %291 : vector<24x1xf32> to vector<24x256xf32>
    %293 = vector.broadcast %52 : vector<1x256xf32> to vector<24x256xf32>
    %294 = arith.mulf %292, %293 : vector<24x256xf32>
    %c17_i32_85 = arith.constant 17 : i32
    %295 = tpu.dynamic_rotate %289 by %c17_i32_85 dim 1 : vector<24x256xf32>, i32 -> vector<24x256xf32>
    %296 = arith.mulf %295, %294 : vector<24x256xf32>
    %297 = arith.addf %290, %296 : vector<24x256xf32>
    %298 = vector.extract_strided_slice %0 {offsets = [0, 1], sizes = [24, 1], strides = [1, 1]} : vector<24x9xf32> to vector<24x1xf32>
    %299 = vector.broadcast %298 : vector<24x1xf32> to vector<24x256xf32>
    %300 = vector.broadcast %64 : vector<1x256xf32> to vector<24x256xf32>
    %301 = arith.mulf %299, %300 : vector<24x256xf32>
    %c16_i32_86 = arith.constant 16 : i32
    %302 = tpu.dynamic_rotate %289 by %c16_i32_86 dim 1 : vector<24x256xf32>, i32 -> vector<24x256xf32>
    %303 = arith.mulf %302, %301 : vector<24x256xf32>
    %304 = arith.addf %297, %303 : vector<24x256xf32>
    %305 = vector.extract_strided_slice %0 {offsets = [0, 2], sizes = [24, 1], strides = [1, 1]} : vector<24x9xf32> to vector<24x1xf32>
    %306 = vector.broadcast %305 : vector<24x1xf32> to vector<24x256xf32>
    %307 = vector.broadcast %76 : vector<1x256xf32> to vector<24x256xf32>
    %308 = arith.mulf %306, %307 : vector<24x256xf32>
    %c15_i32_87 = arith.constant 15 : i32
    %309 = tpu.dynamic_rotate %289 by %c15_i32_87 dim 1 : vector<24x256xf32>, i32 -> vector<24x256xf32>
    %310 = arith.mulf %309, %308 : vector<24x256xf32>
    %311 = arith.addf %304, %310 : vector<24x256xf32>
    %312 = vector.extract_strided_slice %0 {offsets = [0, 3], sizes = [24, 1], strides = [1, 1]} : vector<24x9xf32> to vector<24x1xf32>
    %313 = vector.broadcast %312 : vector<24x1xf32> to vector<24x256xf32>
    %314 = vector.broadcast %97 : vector<1x256xf32> to vector<24x256xf32>
    %315 = arith.mulf %313, %314 : vector<24x256xf32>
    %c1_i32_88 = arith.constant 1 : i32
    %316 = tpu.dynamic_rotate %289 by %c1_i32_88 dim 1 : vector<24x256xf32>, i32 -> vector<24x256xf32>
    %317 = arith.mulf %316, %315 : vector<24x256xf32>
    %318 = arith.addf %311, %317 : vector<24x256xf32>
    %319 = vector.extract_strided_slice %0 {offsets = [0, 4], sizes = [24, 1], strides = [1, 1]} : vector<24x9xf32> to vector<24x1xf32>
    %320 = vector.broadcast %319 : vector<24x1xf32> to vector<24x256xf32>
    %321 = arith.mulf %289, %320 : vector<24x256xf32>
    %322 = arith.addf %318, %321 : vector<24x256xf32>
    %323 = vector.extract_strided_slice %0 {offsets = [0, 5], sizes = [24, 1], strides = [1, 1]} : vector<24x9xf32> to vector<24x1xf32>
    %324 = vector.broadcast %323 : vector<24x1xf32> to vector<24x256xf32>
    %325 = vector.broadcast %109 : vector<1x256xf32> to vector<24x256xf32>
    %326 = arith.mulf %324, %325 : vector<24x256xf32>
    %c255_i32_89 = arith.constant 255 : i32
    %327 = tpu.dynamic_rotate %289 by %c255_i32_89 dim 1 : vector<24x256xf32>, i32 -> vector<24x256xf32>
    %328 = arith.mulf %327, %326 : vector<24x256xf32>
    %329 = arith.addf %322, %328 : vector<24x256xf32>
    %330 = vector.extract_strided_slice %0 {offsets = [0, 6], sizes = [24, 1], strides = [1, 1]} : vector<24x9xf32> to vector<24x1xf32>
    %331 = vector.broadcast %330 : vector<24x1xf32> to vector<24x256xf32>
    %332 = vector.broadcast %130 : vector<1x256xf32> to vector<24x256xf32>
    %333 = arith.mulf %331, %332 : vector<24x256xf32>
    %c241_i32_90 = arith.constant 241 : i32
    %334 = tpu.dynamic_rotate %289 by %c241_i32_90 dim 1 : vector<24x256xf32>, i32 -> vector<24x256xf32>
    %335 = arith.mulf %334, %333 : vector<24x256xf32>
    %336 = arith.addf %329, %335 : vector<24x256xf32>
    %337 = vector.extract_strided_slice %0 {offsets = [0, 7], sizes = [24, 1], strides = [1, 1]} : vector<24x9xf32> to vector<24x1xf32>
    %338 = vector.broadcast %337 : vector<24x1xf32> to vector<24x256xf32>
    %339 = vector.broadcast %142 : vector<1x256xf32> to vector<24x256xf32>
    %340 = arith.mulf %338, %339 : vector<24x256xf32>
    %c240_i32_91 = arith.constant 240 : i32
    %341 = tpu.dynamic_rotate %289 by %c240_i32_91 dim 1 : vector<24x256xf32>, i32 -> vector<24x256xf32>
    %342 = arith.mulf %341, %340 : vector<24x256xf32>
    %343 = arith.addf %336, %342 : vector<24x256xf32>
    %344 = vector.extract_strided_slice %0 {offsets = [0, 8], sizes = [24, 1], strides = [1, 1]} : vector<24x9xf32> to vector<24x1xf32>
    %345 = vector.broadcast %344 : vector<24x1xf32> to vector<24x256xf32>
    %346 = vector.broadcast %154 : vector<1x256xf32> to vector<24x256xf32>
    %347 = arith.mulf %345, %346 : vector<24x256xf32>
    %c239_i32_92 = arith.constant 239 : i32
    %348 = tpu.dynamic_rotate %289 by %c239_i32_92 dim 1 : vector<24x256xf32>, i32 -> vector<24x256xf32>
    %349 = arith.mulf %348, %347 : vector<24x256xf32>
    %350 = arith.addf %343, %349 : vector<24x256xf32>
    %351 = vector.broadcast %3 : vector<24x1xf32> to vector<24x256xf32>
    %352 = arith.mulf %350, %351 : vector<24x256xf32>
    %353 = vector.broadcast %4 : vector<24x1xf32> to vector<24x256xf32>
    %354 = arith.addf %352, %353 : vector<24x256xf32>
    %355 = arith.negf %354 : vector<24x256xf32>
    %356 = math.exp %355 : vector<24x256xf32>
    %cst_93 = arith.constant 1.000000e+00 : f32
    %357 = vector.broadcast %cst_93 : f32 to vector<24x256xf32>
    %358 = arith.addf %357, %356 : vector<24x256xf32>
    %359 = arith.divf %357, %358 : vector<24x256xf32>
    %360 = arith.mulf %354, %359 : vector<24x256xf32>
    %cst_94 = arith.constant dense<0.000000e+00> : vector<24xf32>
    %361 = vector.multi_reduction <add>, %360, %cst_94 [1] : vector<24x256xf32> to vector<24xf32>
    %362 = vector.shape_cast %361 : vector<24xf32> to vector<24x1xf32>
    %cst_95 = arith.constant 3.906250e-03 : f32
    %363 = vector.broadcast %cst_95 : f32 to vector<24x1xf32>
    %364 = arith.mulf %362, %363 : vector<24x1xf32>
    %365 = arith.mulf %6, %364 : vector<24x1xf32>
    %cst_96 = arith.constant dense<0.000000e+00> : vector<1xf32>
    %366 = vector.multi_reduction <add>, %365, %cst_96 [0] : vector<24x1xf32> to vector<1xf32>
    %367 = vector.shape_cast %366 : vector<1xf32> to vector<1x1xf32>
    %368 = arith.addf %367, %10 : vector<1x1xf32>
    %369 = arith.negf %368 : vector<1x1xf32>
    %370 = math.exp %369 : vector<1x1xf32>
    %cst_97 = arith.constant 1.000000e+00 : f32
    %371 = vector.broadcast %cst_97 : f32 to vector<1x1xf32>
    %372 = arith.addf %371, %370 : vector<1x1xf32>
    %373 = arith.divf %371, %372 : vector<1x1xf32>
    %374 = arith.mulf %368, %373 : vector<1x1xf32>
    %375 = vector.broadcast %374 : vector<1x1xf32> to vector<24x1xf32>
    %376 = arith.mulf %7, %375 : vector<24x1xf32>
    %cst_98 = arith.constant dense<0.000000e+00> : vector<24xf32>
    %377 = vector.multi_reduction <add>, %376, %cst_98 [1] : vector<24x1xf32> to vector<24xf32>
    %378 = vector.shape_cast %377 : vector<24xf32> to vector<24x1xf32>
    %379 = arith.addf %378, %5 : vector<24x1xf32>
    %380 = arith.negf %379 : vector<24x1xf32>
    %381 = math.exp %380 : vector<24x1xf32>
    %cst_99 = arith.constant 1.000000e+00 : f32
    %382 = vector.broadcast %cst_99 : f32 to vector<24x1xf32>
    %383 = arith.addf %382, %381 : vector<24x1xf32>
    %384 = arith.divf %382, %383 : vector<24x1xf32>
    %385 = vector.broadcast %384 : vector<24x1xf32> to vector<24x256xf32>
    %386 = arith.mulf %360, %385 : vector<24x256xf32>
    %387 = arith.truncf %386 : vector<24x256xf32> to vector<24x256xbf16>
    %cst_100 = arith.constant dense<0.000000e+00> : vector<8x256xf32>
    %388 = tpu.matmul %14, %387, %cst_100 {dimension_numbers = #tpu.dot_dimension_numbers<[1], [0], [0], [1], [0, 0, 1, 1], [], []>} : vector<8x24xbf16>, vector<24x256xbf16>, vector<8x256xf32> -> vector<8x256xf32>
    %389 = vector.broadcast %8 : vector<8x1xf32> to vector<8x256xf32>
    %390 = arith.mulf %388, %389 : vector<8x256xf32>
    %391 = vector.broadcast %9 : vector<8x1xf32> to vector<8x256xf32>
    %392 = arith.addf %390, %391 : vector<8x256xf32>
    %393 = arith.addf %392, %277 : vector<8x256xf32>
    %c1_101 = arith.constant 1 : index
    %c0_102 = arith.constant 0 : index
    %c0_103 = arith.constant 0 : index
    %394 = vector.load %arg7[%c1_101, %c0_102, %c0_103] : memref<2x8x256xf32, #tpu.memory_space<vmem>>, vector<1x8x256xf32>
    %395 = vector.shape_cast %394 : vector<1x8x256xf32> to vector<8x256xf32>
    %396 = vector.shape_cast %393 : vector<8x256xf32> to vector<1x8x256xf32>
    tpu.vector_store %arg7[%c1_101, %c0_102, %c0_103], %396 {strides = array<i32>} : memref<2x8x256xf32, #tpu.memory_space<vmem>>, vector<1x8x256xf32>,
    return
  }
  func.func @transform_0(%arg0: i32) -> (i32, i32, i32) {
    %c0_i32 = arith.constant 0 : i32
    %c0_i32_0 = arith.constant 0 : i32
    %c0_i32_1 = arith.constant 0 : i32
    return %arg0, %c0_i32, %c0_i32_0 : i32, i32, i32
  }
  func.func @transform_1(%arg0: i32) -> (i32, i32) {
    %c0_i32 = arith.constant 0 : i32
    %c0_i32_0 = arith.constant 0 : i32
    %c0_i32_1 = arith.constant 0 : i32
    return %c0_i32, %c0_i32_0 : i32, i32
  }
  func.func @transform_2(%arg0: i32) -> (i32, i32) {
    %c0_i32 = arith.constant 0 : i32
    %c0_i32_0 = arith.constant 0 : i32
    %c0_i32_1 = arith.constant 0 : i32
    return %c0_i32, %c0_i32_0 : i32, i32
  }
  func.func @transform_3(%arg0: i32) -> (i32, i32) {
    %c0_i32 = arith.constant 0 : i32
    %c0_i32_0 = arith.constant 0 : i32
    %c0_i32_1 = arith.constant 0 : i32
    return %c0_i32, %c0_i32_0 : i32, i32
  }
  func.func @transform_4(%arg0: i32) -> (i32, i32) {
    %c0_i32 = arith.constant 0 : i32
    %c0_i32_0 = arith.constant 0 : i32
    %c0_i32_1 = arith.constant 0 : i32
    return %c0_i32, %c0_i32_0 : i32, i32
  }
  func.func @transform_5(%arg0: i32) -> (i32, i32) {
    %c0_i32 = arith.constant 0 : i32
    %c0_i32_0 = arith.constant 0 : i32
    %c0_i32_1 = arith.constant 0 : i32
    return %c0_i32, %c0_i32_0 : i32, i32
  }
  func.func @transform_6(%arg0: i32) -> (i32, i32, i32) {
    %c0_i32 = arith.constant 0 : i32
    %c0_i32_0 = arith.constant 0 : i32
    %c0_i32_1 = arith.constant 0 : i32
    return %arg0, %c0_i32, %c0_i32_0 : i32, i32, i32
  }
}

</mosaic_0001>

<bundles_post_ra>
// kernel: mbconv_forward.1
= control target key start
LH: loop header
LB: loop body
LE: loop exit
PB: predicated region body
PF: predicated region fallthrough
CT: control target
= control target key end

     0   :  { %vm168_vm0 = vcmask 1043456   ;;  %v3140_v2 = vmov 0   ;;  %v1807_v4 = vmov 9   ;;  %vm161_vm1 = vcmask 64512   ;;  %s1820_s13 = smov 17   ;;  %s1821_s14 = smov 113   ;;  %s3132_s0 = inlined_call_operand.vmem [shape: f32[2,8,256], index: 0, kind: input, shape index: {}]   ;;  %s3133_s1 = inlined_call_operand.vmem [shape: f32[24,8], index: 1, kind: input, shape index: {}]   ;;  %s3134_s3 = inlined_call_operand.vmem [shape: f32[24,16], index: 3, kind: input, shape index: {}]   ;;  %s3135_s5 = inlined_call_operand.<no memory space> [shape: f32[1,1], index: 5, kind: input, shape index: {}]   ;;  %s3136_s2 = inlined_call_operand.vmem [shape: f32[8,24], index: 2, kind: input, shape index: {}]   ;;  %s3137_s4 = inlined_call_operand.vmem [shape: f32[8,2], index: 4, kind: input, shape index: {}]   ;;  %s3138_s6 = inlined_call_operand.vmem [shape: f32[2,8,256], index: 6, kind: output, shape index: {}]  }
   0x1   :  { %v158_v0 = vld [vmem:[%s3132_s0 + $0x8] sm:$0xff]  ;;  %v157_v1 = vld [vmem:[%s3132_s0] sm:$0xff]  ;;  %207 = vmatprep.mubr.bf16.mxu0 %v3140_v2  ;;  %1644 = vset.pattern.permute.xlu1 %v1807_v4  ;;  %v1882_v8 = vld [vmem:[%s3134_s3 + $0x10] sm:$0xff]  ;;  %v1808_v13 = vmov 10   ;;  %v3139_v16 = vmov 1   ;;  %v1810_v17 = vmov 2  }
   0x2   :  { %v31_v3 = vld [vmem:[%s3133_s1] sm:$0xff]  ;;  %v160_v5 = vpack.c.bf16 %v158_v0, %v158_v0  ;;  %v159_v6 = vpack.c.bf16 %v157_v1, %v157_v1  ;;  %v32_v7 = vld [vmem:[%s3133_s1 + $0x8] sm:$0xff]  ;;  %1643 = vset.pattern.permute.xlu0 %v1807_v4  ;;  %955 = vmatprep.mubr.bf16.mxu1 %v3140_v2  ;;  %v33_v14 = vld [vmem:[%s3133_s1 + $0x10] sm:$0xff]  ;;  %v1811_v18 = vmov 3   ;;  %v1812_v19 = vmov 5   ;;  %s1819_s1 = smov 127  }
   0x3   :  { %238 = vperm.xlu1 %1644, %v1882_v8   ;;  %v1889_v9 = vld [vmem:[%s3134_s3] sm:$0xff]  ;;  %v1893_v11 = vpack.c.bf16 %v32_v7, %v31_v3  ;;  %v1899_v12 = vld [vmem:[%s3134_s3 + $0x8] sm:$0xff]  ;;  %v1909_v15 = vpack.c.bf16 %v33_v14, %v33_v14  ;;  %v1813_v20 = vmov 4   ;;  %v1814_v21 = vmov 6   ;;  %s1822_s15 = smov 16   ;;  %s1823_s16 = smov 112  }
   0x4   :  { %1571 = vmatprep.subr.msk.bf16.mxu0 %vm168_vm0, %v160_v5  ;;  %v170_v10 = vsel %vm168_vm0, %v159_v6, 0  ;;  %228 = vperm.xlu0 %1643, %v1889_v9   ;;  %v1815_v22 = vmov 7   ;;  %v1816_v23 = vmov 8   ;;  %v1817_v24 = vmov 11   ;;  %s1824_s17 = smov 15   ;;  %s1825_s18 = smov 1  }
   0x5   :  { %3225 = vst [vmem:[#allocation3_spill] sm:$0xff] %v1893_v11  ;;  %176 = vmatpush1.bf16.msra.mxu0 %v170_v10  ;;  %3226 = vst [vmem:[#allocation4_spill] sm:$0xff] %v1909_v15  ;;  %v1818_v25 = vmov 12   ;;  %s1826_s19 = smov 111   ;;  %s1829_s24 = smov 2  }
   0x7   :  { %1645 = vset.pattern.permute.xlu1 %v1808_v13 }
   0x8   :  { %1572 = vmatmul.mubr.msk.bf16.vlgmr.msra.gmra.mrb[0].mxu0 %vm161_vm1, %v1893_v11  ;;  %248 = vperm.xlu1 %1645, %v1889_v9  }
   0x9   :  { %217 = vmatprep.mubr.bf16.mxu0 %v3140_v2  ;;  %233 = vperm.xlu0 %1643, %v1899_v12  }
   0xc   :  { %256 = vperm.xlu1 %1645, %v1882_v8  }
   0xd   :  { %1646 = vset.pattern.permute.xlu0 %v1808_v13 }
   0xe   :  { %252 = vperm.xlu0 %1646, %v1899_v12  }
  0x10   :  { %1573 = vmatmul.mubr.msk.bf16.gmra.mrb[4].mxu0 %vm161_vm1, %v1909_v15  ;;  %1647 = vset.pattern.permute.xlu1 %v3140_v2 }
  0x11   :  { %308 = vperm.xlu1 %1647, %v1889_v9   ;;  %1535 = vmatprep.mubr.bf16.mxu0 %v3140_v2 }
  0x12   :  { %1648 = vset.pattern.permute.xlu0 %v3140_v2 }
  0x13   :  { %312 = vperm.xlu0 %1648, %v1899_v12  }
  0x15   :  { %1649 = vset.pattern.permute.xlu1 %v3139_v16 }
  0x16   :  { %357 = vperm.xlu1 %1649, %v1889_v9  }
  0x17   :  { %316 = vperm.xlu0 %1648, %v1882_v8  }
  0x1a   :  { %361 = vperm.xlu1 %1649, %v1899_v12  }
  0x1b   :  { %1650 = vset.pattern.permute.xlu0 %v1810_v17 }
  0x1c   :  { %406 = vperm.xlu0 %1650, %v1889_v9  }
  0x1e   :  { %365 = vperm.xlu1 %1649, %v1882_v8  }
  0x20   :  { %1652 = vset.pattern.permute.xlu0 %v1811_v18 }
  0x21   :  { %455 = vperm.xlu0 %1652, %v1889_v9  }
  0x22   :  { %1651 = vset.pattern.permute.xlu1 %v1810_v17 }
  0x23   :  { %410 = vperm.xlu1 %1651, %v1899_v12  }
  0x25   :  { %1656 = vset.pattern.permute.xlu0 %v1812_v19 }
  0x26   :  { %532 = vperm.xlu0 %1656, %v1899_v12  }
  0x27   :  { %414 = vperm.xlu1 %1651, %v1882_v8  }
  0x2a   :  { %1657 = vset.pattern.permute.xlu0 %v1813_v20 }
  0x2b   :  { %1653 = vset.pattern.permute.xlu1 %v1811_v18  ;;  %504 = vperm.xlu0 %1657, %v1889_v9  }
  0x2c   :  { %459 = vperm.xlu1 %1653, %v1899_v12  }
  0x2f   :  { %512 = vperm.xlu0 %1657, %v1882_v8  }
  0x30   :  { %463 = vperm.xlu1 %1653, %v1882_v8  }
  0x33   :  { %1659 = vset.pattern.permute.xlu0 %v1814_v21 }
  0x34   :  { %1654 = vset.pattern.permute.xlu1 %v1813_v20  ;;  %581 = vperm.xlu0 %1659, %v1899_v12  }
  0x35   :  { %508 = vperm.xlu1 %1654, %v1899_v12  }
  0x38   :  { %585 = vperm.xlu0 %1659, %v1882_v8  }
  0x39   :  { %1655 = vset.pattern.permute.xlu1 %v1812_v19 }
  0x3a   :  { %528 = vperm.xlu1 %1655, %v1889_v9  }
  0x3c   :  { %1661 = vset.pattern.permute.xlu0 %v1815_v22 }
  0x3d   :  { %630 = vperm.xlu0 %1661, %v1899_v12  }
  0x3e   :  { %536 = vperm.xlu1 %1655, %v1882_v8  }
  0x41   :  { %634 = vperm.xlu0 %1661, %v1882_v8  }
  0x42   :  { %1658 = vset.pattern.permute.xlu1 %v1814_v21 }
  0x43   :  { %577 = vperm.xlu1 %1658, %v1889_v9  }
  0x45   :  { %1663 = vset.pattern.permute.xlu0 %v1816_v23 }
  0x46   :  { %679 = vperm.xlu0 %1663, %v1899_v12  }
  0x47   :  { %1660 = vset.pattern.permute.xlu1 %v1815_v22 }
  0x48   :  { %626 = vperm.xlu1 %1660, %v1889_v9  }
  0x4a   :  { %683 = vperm.xlu0 %1663, %v1882_v8  }
  0x4c   :  { %1662 = vset.pattern.permute.xlu1 %v1816_v23 }
  0x4d   :  { %675 = vperm.xlu1 %1662, %v1889_v9  }
  0x4e   :  { %1665 = vset.pattern.permute.xlu0 %v1817_v24 }
  0x4f   :  { %728 = vperm.xlu0 %1665, %v1899_v12  }
  0x51   :  { %1664 = vset.pattern.permute.xlu1 %v1817_v24 }
  0x52   :  { %724 = vperm.xlu1 %1664, %v1889_v9  }
  0x53   :  { %732 = vperm.xlu0 %1665, %v1882_v8  }
  0x56   :  { %1666 = vset.pattern.permute.xlu1 %v1818_v25 }
  0x57   :  { %742 = vperm.xlu1 %1666, %v1889_v9   ;;  %1667 = vset.pattern.permute.xlu0 %v1818_v25 }
  0x82   :  { %v1950_v26 = vpop.permute.xlu1 %238 }
  0x83   :  { %3227 = vst [vmem:[#allocation5_spill] sm:$0xff] %v1950_v26  ;;  %v1952_v27 = vpop.permute.xlu0 %228 }
  0x84   :  { %3228 = vst [vmem:[#allocation6_spill] sm:$0xff] %v1952_v27 }
  0x87   :  { %v1955_v31 = vpop.permute.xlu1 %248 }
  0x88   :  { %3229 = vst [vmem:[#allocation7_spill] sm:$0xff] %v1955_v31  ;;  %v1959_v36 = vpop.permute.xlu0 %233 }
  0x89   :  { %3230 = vst [vmem:[#allocation8_spill] sm:$0xff] %v1959_v36 }
  0x8b   :  { %v1988_v62 = vpop.permute.xlu1 %256 }
  0x8c   :  { %3232 = vst [vmem:[#allocation10_spill] sm:$0xff] %v1988_v62 }
  0x8d   :  { %v1963_v43 = vpop.permute.xlu0 %252 }
  0x8e   :  { %3231 = vst [vmem:[#allocation9_spill] sm:$0xff] %v1963_v43 }
  0x90   :  { %v2002_v4 = vpop.permute.xlu1 %308 }
  0x92   :  { %v2012_v13 = vpop.permute.xlu0 %312 }
  0x95   :  { %v2009_v9 = vpop.permute.xlu1 %357 }
  0x96   :  { %3233 = vst [vmem:[#allocation11_spill] sm:$0xff] %v2009_v9  ;;  %v2024_v18 = vpop.permute.xlu0 %316 }
  0x97   :  { %3234 = vst [vmem:[#allocation12_spill] sm:$0xff] %v2024_v18 }
  0x99   :  { %v2022_v17 = vpop.permute.xlu1 %361 }
  0x9b   :  { %v2032_v22 = vpop.permute.xlu0 %406 }
  0x9d   :  { %v2030_v21 = vpop.permute.xlu1 %365 }
  0x9e   :  { %3235 = vst [vmem:[#allocation13_spill] sm:$0xff] %v2030_v21 }
  0xdb   :  { %v209_v28 = vpop.f32.mrb[0].mxu0 }
  0xdc   :  { %v241_v29 = vmul.f32 %v1952_v27, %v209_v28  ;;  %v211_v30 = vpop.f32.mrb[1].mxu0  ;;  %v2044_v28 = vpop.permute.xlu1 %410 }
  0xdd   :  { %v242_v32 = vmul.f32 %v1952_v27, %v211_v30  ;;  %v213_v33 = vpop.f32.mrb[2].mxu0 }
  0xde   :  { %v259_v34 = vadd.f32 %v1955_v31, %v241_v29  ;;  %v215_v35 = vpop.f32.mrb[3].mxu0  ;;  %v243_v41 = vmul.f32 %v1959_v36, %v213_v33  ;;  %v2046_v29 = vpop.permute.xlu0 %455 }
  0xdf   :  { %v260_v38 = vadd.f32 %v1955_v31, %v242_v32  ;;  %v244_v55 = vmul.f32 %v1959_v36, %v215_v35 }
  0xe0   :  { %v1574_v37 = vmul.f32 -1.442695, %v259_v34  ;;  %v261_v46 = vadd.f32 %v1963_v43, %v243_v41  ;;  %v2052_v32 = vpop.permute.xlu1 %414 }
  0xe1   :  { %v1575_v40 = vmul.f32 -1.442695, %v260_v38  ;;  %v262_v57 = vadd.f32 %v1963_v43, %v244_v55  ;;  %3236 = vst [vmem:[#allocation14_spill] sm:$0xff] %v2052_v32 }
  0xe2   :  { %1673 = vpow2.f32 %v1574_v37  ;;  %v1576_v48 = vmul.f32 -1.442695, %v261_v46  ;;  %v2054_v33 = vpop.permute.xlu0 %532 }
  0xe3   :  { %v219_v39 = vpop.f32.mrb[4].mxu0  ;;  %1675 = vpow2.f32 %v1575_v40  ;;  %v1577_v59 = vmul.f32 -1.442695, %v262_v57 }
  0xe4   :  { %v221_v42 = vpop.f32.mrb[5].mxu0  ;;  %v245_v63 = vmul.f32 %v1950_v26, %v219_v39  ;;  %v2066_v37 = vpop.permute.xlu1 %459 }
  0xe5   :  { %v223_v44 = vpop.f32.mrb[6].mxu0  ;;  %v246_v6 = vmul.f32 %v1950_v26, %v221_v42 }
  0xe6   :  { %v224_v45 = vpop.f32.mrb[7].mxu0  ;;  %v263_v1 = vadd.f32 %v1988_v62, %v245_v63  ;;  %v3142_v63 = vlaneseq }
  0xe7   :  { %v264_v10 = vadd.f32 %v1988_v62, %v246_v6 }
  0xe8   :  { %v1578_v5 = vmul.f32 -1.442695, %v263_v1  ;;  %v2076_v41 = vpop.permute.xlu1 %463 }
  0xe9   :  { %v1579_v14 = vmul.f32 -1.442695, %v264_v10  ;;  %3239 = vst [vmem:[#allocation17_spill] sm:$0xff] %v2076_v41 }
  0xec   :  { %v1674_v47 = vpop.eup %1673  ;;  %v2089_v45 = vpop.permute.xlu1 %508 }
  0xed   :  { %v283_v49 = vadd.f32 1.0, %v1674_v47  ;;  %v1676_v50 = vpop.eup %1675 }
  0xee   :  { %v284_v51 = vadd.f32 1.0, %v1676_v50 }
  0xef   :  { %1677 = vrcp.f32 %v283_v49 }
  0xf0   :  { %1679 = vpow2.f32 %v1576_v48 }
  0xf1   :  { %1681 = vrcp.f32 %v284_v51 }
  0xf9   :  { %v1678_v52 = vpop.eup %1677 }
  0xfa   :  { %v1680_v53 = vpop.eup %1679  ;;  %v1966_v54 = vmul.f32 %v1678_v52, %v259_v34 }
  0xfb   :  { %v285_v56 = vadd.f32 1.0, %v1680_v53  ;;  %v1682_v58 = vpop.eup %1681 }
  0xfc   :  { %545 = vrot.lane.b32.xlu1 %v1966_v54, %s1819_s1  ;;  %325 = vrot.lane.b32.xlu0 %v1966_v54, %s1820_s13  ;;  %v1982_v60 = vmul.f32 %v1682_v58, %v260_v38  ;;  %v2068_v38 = vpop.permute.xlu0 %504 }
  0xfd   :  { %1683 = vrcp.f32 %v285_v56 }
  0xfe   :  { %1685 = vpow2.f32 %v1577_v59 }
  0xff   :  { %1687 = vpow2.f32 %v1578_v5  ;;  %v2151_v5 = vand.u32 127, %v3142_v63 }
 0x100   :  { %594 = vrot.lane.b32.xlu1 %v1966_v54, %s1821_s14  ;;  %374 = vrot.lane.b32.xlu0 %v1966_v54, %s1822_s15  ;;  %v2074_v39 = vpop.permute.xlu0 %512 }
 0x101   :  { %3238 = vst [vmem:[#allocation16_spill] sm:$0xff] %v2074_v39  ;;  %vm386_vm9 = vcmp.lt.s32.totalorder %v2151_v5, 16  ;;  %vm337_vm11 = vcmp.lt.s32.totalorder %v2151_v5, 17  ;;  %vm435_vm13 = vcmp.lt.s32.totalorder %v2151_v5, 15  ;;  %vm484_vm14 = vcmp.lt.s32.totalorder %v2151_v5, 1 }
 0x104   :  { %643 = vrot.lane.b32.xlu1 %v1966_v54, %s1823_s16  ;;  %423 = vrot.lane.b32.xlu0 %v1966_v54, %s1824_s17  ;;  %v2083_v44 = vpop.permute.xlu0 %581 }
 0x107   :  { %v1684_v61 = vpop.eup %1683 }
 0x108   :  { %472 = vrot.lane.b32.xlu0 %v1966_v54, %s1825_s18  ;;  %600 = vrot.lane.b32.xlu1 %v1982_v60, %s1821_s14  ;;  %v1995_v0 = vmul.f32 %v1684_v61, %v261_v46  ;;  %v1686_v3 = vpop.eup %1685  ;;  %v2095_v46 = vpop.permute.xlu0 %585 }
 0x109   :  { %v286_v7 = vadd.f32 1.0, %v1686_v3  ;;  %v1688_v19 = vpop.eup %1687  ;;  %3241 = vst [vmem:[#allocation19_spill] sm:$0xff] %v2095_v46 }
 0x10a   :  { %v287_v23 = vadd.f32 1.0, %v1688_v19 }
 0x10b   :  { %1689 = vrcp.f32 %v286_v7 }
 0x10c   :  { %692 = vrot.lane.b32.xlu0 %v1966_v54, %s1826_s19  ;;  %649 = vrot.lane.b32.xlu1 %v1982_v60, %s1823_s16  ;;  %1691 = vpow2.f32 %v1579_v14  ;;  %v2102_v47 = vpop.permute.xlu0 %630  ;;  %v45_v14 = vand.u32 15, %v2151_v5 }
 0x10d   :  { %1693 = vrcp.f32 %v287_v23 }
 0x110   :  { %331 = vrot.lane.b32.xlu0 %v1982_v60, %s1820_s13  ;;  %327 = vrot.lane.b32.xlu1 %v1995_v0, %s1820_s13  ;;  %v2112_v50 = vpop.permute.xlu0 %634 }
 0x111   :  { %3243 = vst [vmem:[#allocation21_spill] sm:$0xff] %v2112_v50 }
 0x114   :  { %380 = vrot.lane.b32.xlu0 %v1982_v60, %s1822_s15  ;;  %376 = vrot.lane.b32.xlu1 %v1995_v0, %s1822_s15 }
 0x115   :  { %v1690_v20 = vpop.eup %1689 }
 0x116   :  { %v2038_v24 = vmul.f32 %v1690_v20, %v262_v57  ;;  %v1692_v25 = vpop.eup %1691 }
 0x117   :  { %v288_v30 = vadd.f32 1.0, %v1692_v25  ;;  %v1694_v34 = vpop.eup %1693  ;;  %v65_v25 = vadd.s32 4294967280, %v2151_v5 }
 0x118   :  { %429 = vrot.lane.b32.xlu0 %v1982_v60, %s1824_s17  ;;  %425 = vrot.lane.b32.xlu1 %v1995_v0, %s1824_s17  ;;  %v2064_v35 = vmul.f32 %v1694_v34, %v263_v1  ;;  %v99_v34 = vadd.s32 1, %v45_v14 }
 0x119   :  { %1695 = vrcp.f32 %v288_v30  ;;  %v73_v30 = vadd.s32 4294967295, %v45_v14  ;;  %vm67_vm2 = vcmp.ge.s32.totalorder %v65_v25, 0  ;;  %v1827_v14 = vmov 0.0  }
 0x11a   :  { %3237 = vst [vmem:[#allocation15_spill] sm:$0xff] %v2064_v35  ;;  %vm103_vm4 = vcmp.lt.s32.totalorder %v99_v34, 16  ;;  %v2174_v36 = vsel %vm67_vm2, 1.0, %v1827_v14 }
 0x11b   :  { %vm75_vm3 = vcmp.ge.s32.totalorder %v73_v30, 0  ;;  %vm107_vm7 = vmand %vm67_vm2, %vm103_vm4  ;;  %v2190_v11 = vsel %vm103_vm4, 1.0, %v1827_v14  ;;  %v2206_v34 = vmul.f32 %v2174_v36, %v2009_v9  ;;  %vm655_vm4 = vcmp.lt.s32.totalorder %v2151_v5, 112 }
 0x11c   :  { %478 = vrot.lane.b32.xlu0 %v1982_v60, %s1825_s18  ;;  %474 = vrot.lane.b32.xlu1 %v1995_v0, %s1825_s18  ;;  %vm81_vm6 = vmand %vm67_vm2, %vm75_vm3  ;;  %v2183_v25 = vsel %vm75_vm3, 1.0, %v1827_v14  ;;  %v2187_v15 = vsel %vm107_vm7, 1.0, %v1827_v14  ;;  %vm606_vm2 = vcmp.lt.s32.totalorder %v2151_v5, 113  ;;  %vm557_vm3 = vcmp.lt.s32.totalorder %v2151_v5, 127 }
 0x11d   :  { %vm913_vm7 = vcmask 195584  }
 0x120   :  { %551 = vrot.lane.b32.xlu0 %v1982_v60, %s1819_s1  ;;  %547 = vrot.lane.b32.xlu1 %v1995_v0, %s1819_s1 }
 0x123   :  { %v1696_v40 = vpop.eup %1695 }
 0x124   :  { %698 = vrot.lane.b32.xlu0 %v1982_v60, %s1826_s19  ;;  %694 = vrot.lane.b32.xlu1 %v1995_v0, %s1826_s19  ;;  %v2081_v42 = vmul.f32 %v1696_v40, %v264_v10  ;;  %v40_v10 = vadd.s32 128, %v2151_v5 }
 0x126   :  { %3240 = vst [vmem:[#allocation18_spill] sm:$0xff] %v2081_v42  ;;  %v52_v23 = vand.u32 15, %v40_v10  ;;  %v2166_v63 = vadd.s32 16, %v40_v10  ;;  %v2177_v10 = vsel %vm81_vm6, 1.0, %v1827_v14  ;;  %vm816_vm6 = vcmask 121968  }
 0x128   :  { %596 = vrot.lane.b32.xlu0 %v1995_v0, %s1821_s14  ;;  %333 = vrot.lane.b32.xlu1 %v2038_v24, %s1820_s13  ;;  %v74_v2 = vadd.s32 4294967295, %v52_v23  ;;  %v100_v62 = vadd.s32 1, %v52_v23  ;;  %vm136_vm8 = vcmp.lt.s32.totalorder %v2166_v63, 256 }
 0x12a   :  { %vm76_vm5 = vcmp.ge.s32.totalorder %v74_v2, 0  ;;  %vm104_vm10 = vcmp.lt.s32.totalorder %v100_v62, 16  ;;  %v2211_v2 = vmul.f32 %v2177_v10, %v2002_v4 }
 0x12b   :  { %v2180_v23 = vsel %vm76_vm5, 1.0, %v1827_v14  ;;  %vm140_vm12 = vmand %vm136_vm8, %vm76_vm5  ;;  %vm704_vm5 = vcmp.lt.s32.totalorder %v2151_v5, 111 }
 0x12c   :  { %645 = vrot.lane.b32.xlu0 %v1995_v0, %s1823_s16  ;;  %382 = vrot.lane.b32.xlu1 %v2038_v24, %s1822_s15  ;;  %3249 = vst [vmem:[#allocation27_spill] sm:$0xff] %v2211_v2  ;;  %vm2272_vm15 = vmand %vm136_vm8, %vm104_vm10 }
 0x130   :  { %602 = vrot.lane.b32.xlu0 %v2038_v24, %s1821_s14  ;;  %431 = vrot.lane.b32.xlu1 %v2038_v24, %s1824_s17 }
 0x134   :  { %651 = vrot.lane.b32.xlu0 %v2038_v24, %s1823_s16  ;;  %480 = vrot.lane.b32.xlu1 %v2038_v24, %s1825_s18 }
 0x138   :  { %553 = vrot.lane.b32.xlu1 %v2038_v24, %s1819_s1  ;;  %378 = vrot.lane.b32.xlu0 %v2064_v35, %s1822_s15 }
 0x13c   :  { %700 = vrot.lane.b32.xlu1 %v2038_v24, %s1826_s19  ;;  %746 = vperm.xlu0 %1667, %v1899_v12   ;;  %v2097_v12 = vpop.permute.xlu1 %528 }
 0x140   :  { %329 = vrot.lane.b32.xlu1 %v2064_v35, %s1820_s13  ;;  %555 = vrot.lane.b32.xlu0 %v2081_v42, %s1819_s1  ;;  %v2106_v48 = vpop.permute.xlu1 %536 }
 0x141   :  { %3242 = vst [vmem:[#allocation20_spill] sm:$0xff] %v2106_v48 }
 0x144   :  { %427 = vrot.lane.b32.xlu1 %v2064_v35, %s1824_s17  ;;  %604 = vrot.lane.b32.xlu0 %v2081_v42, %s1821_s14  ;;  %v2110_v49 = vpop.permute.xlu1 %577 }
 0x148   :  { %476 = vrot.lane.b32.xlu1 %v2064_v35, %s1825_s18  ;;  %750 = vperm.xlu0 %1667, %v1882_v8   ;;  %v2116_v51 = vpop.permute.xlu1 %626  ;;  %v2118_v8 = vpop.permute.xlu0 %679 }
 0x14c   :  { %549 = vrot.lane.b32.xlu1 %v2064_v35, %s1819_s1  ;;  %v2124_v52 = vpop.permute.xlu1 %675  ;;  %v2126_v53 = vpop.permute.xlu0 %683 }
 0x14d   :  { %3244 = vst [vmem:[#allocation22_spill] sm:$0xff] %v2126_v53  ;;  %v2200_v53 = vsel %vm104_vm10, 1.0, %v1827_v14 }
 0x14e   :  { %v2225_v39 = vmul.f32 %v2200_v53, %v2032_v22 }
 0x150   :  { %598 = vrot.lane.b32.xlu1 %v2064_v35, %s1821_s14  ;;  %v2130_v55 = vpop.permute.xlu1 %724  ;;  %v2132_v56 = vpop.permute.xlu0 %728  ;;  %3252 = vst [vmem:[#allocation30_spill] sm:$0xff] %v2225_v39 }
 0x151   :  { %3245 = vst [vmem:[#allocation23_spill] sm:$0xff] %v2130_v55  ;;  %3246 = vst [vmem:[#allocation24_spill] sm:$0xff] %v2132_v56 }
 0x154   :  { %647 = vrot.lane.b32.xlu1 %v2064_v35, %s1823_s16  ;;  %v2138_v57 = vpop.permute.xlu1 %742  ;;  %v2140_v58 = vpop.permute.xlu0 %732 }
 0x155   :  { %3247 = vst [vmem:[#allocation25_spill] sm:$0xff] %v2138_v57  ;;  %3248 = vst [vmem:[#allocation26_spill] sm:$0xff] %v2140_v58 }
 0x158   :  { %335 = vrot.lane.b32.xlu1 %v2081_v42, %s1820_s13 }
 0x15c   :  { %384 = vrot.lane.b32.xlu1 %v2081_v42, %s1822_s15  ;;  %v3345_v5 = vld [vmem:[#allocation26_spill] sm:$0xff] }
 0x160   :  { %433 = vrot.lane.b32.xlu1 %v2081_v42, %s1824_s17 }
 0x164   :  { %482 = vrot.lane.b32.xlu1 %v2081_v42, %s1825_s18 }
 0x168   :  { %696 = vrot.lane.b32.xlu1 %v2064_v35, %s1826_s19  ;;  %v2227_v35 = vsel %vm140_vm12, 1.0, %v1827_v14 }
 0x16c   :  { %653 = vrot.lane.b32.xlu1 %v2081_v42, %s1823_s16 }
 0x16e   :  { %v2144_v59 = vpop.permute.xlu1 %545  ;;  %v326_v61 = vpop.permute.xlu0 %325 }
 0x170   :  { %702 = vrot.lane.b32.xlu1 %v2081_v42, %s1826_s19  ;;  %v2215_v42 = vmul.f32 %v2180_v23, %v2002_v4 }
 0x172   :  { %v2148_v1 = vpop.permute.xlu1 %594  ;;  %v375_v3 = vpop.permute.xlu0 %374  ;;  %3250 = vst [vmem:[#allocation28_spill] sm:$0xff] %v2215_v42 }
 0x176   :  { %v2153_v6 = vpop.permute.xlu1 %643  ;;  %v424_v7 = vpop.permute.xlu0 %423 }
 0x17a   :  { %v2157_v19 = vpop.permute.xlu0 %472  ;;  %v2159_v20 = vpop.permute.xlu1 %600 }
 0x17e   :  { %v2162_v40 = vpop.permute.xlu0 %692  ;;  %v2164_v16 = vpop.permute.xlu1 %649 }
 0x182   :  { %v332_v26 = vpop.permute.xlu0 %331  ;;  %v2168_v43 = vpop.permute.xlu1 %327 }
 0x183   :  { %v341_v50 = vsel %vm337_vm11, %v332_v26, %v326_v61 }
 0x184   :  { %v344_v32 = vmul.f32 %v341_v50, %v2211_v2  ;;  %v2247_v50 = vmul.f32 %v2183_v25, %v2046_v29  ;;  %v2251_v2 = vmul.f32 %v2180_v23, %v2046_v29 }
 0x186   :  { %v381_v31 = vpop.permute.xlu0 %380  ;;  %v2185_v27 = vpop.permute.xlu1 %376 }
 0x187   :  { %v387_v58 = vsel %vm386_vm9, %v375_v3, %v381_v31  ;;  %v390_v30 = vsel %vm386_vm9, %v381_v31, %v375_v3  ;;  %v2219_v31 = vmul.f32 %v2187_v15, %v2032_v22  ;;  %v338_v3 = vsel %vm337_vm11, %v326_v61, %v332_v26 }
 0x188   :  { %v393_v46 = vmul.f32 %v390_v30, %v2206_v34  ;;  %v394_v48 = vmul.f32 %v387_v58, %v2009_v9  ;;  %v345_v22 = vmul.f32 %v338_v3, %v2215_v42  ;;  %v11_v58 = vstv %s3135_s5  ;;  %s1828_s5 = smov 14  }
 0x189   :  { %3251 = vst [vmem:[#allocation29_spill] sm:$0xff] %v2219_v31  ;;  %12 = vst [vmem:[#allocation2] sm:$0x1] %v11_v58  ;;  %v2267_v3 = vmul.f32 %v2227_v35, %v2110_v49  ;;  %v2294_v9 = vsel %vm136_vm8, 1.0, %v1827_v14 }
 0x18a   :  { %v430_v41 = vpop.permute.xlu0 %429  ;;  %v2231_v4 = vpop.permute.xlu1 %425 }
 0x18b   :  { %v436_v18 = vsel %vm435_vm13, %v424_v7, %v430_v41  ;;  %v439_v26 = vsel %vm435_vm13, %v430_v41, %v424_v7  ;;  %v2255_v41 = vmul.f32 %v2190_v11, %v2097_v12  ;;  %v2259_v7 = vmul.f32 %v2200_v53, %v2097_v12  ;;  %3255 = vst [vmem:[#allocation33_spill] sm:$0xff] %v2267_v3 }
 0x18c   :  { %v442_v61 = vmul.f32 %v439_v26, %v2219_v31  ;;  %v443_v30 = vmul.f32 %v436_v18, %v2225_v39  ;;  %v2263_v18 = vmul.f32 %v2183_v25, %v2110_v49  ;;  %v399_v26 = vadd.f32 %v393_v46, %v344_v32 }
 0x18d   :  { %3253 = vst [vmem:[#allocation31_spill] sm:$0xff] %v2259_v7  ;;  %v400_v39 = vadd.f32 %v394_v48, %v345_v22  ;;  %v515_v48 = vmul.f32 %v2068_v38, %v1966_v54  ;;  %v516_v22 = vmul.f32 %v2068_v38, %v1982_v60  ;;  %v607_v54 = vsel %vm606_vm2, %v2148_v1, %v2159_v20 }
 0x18e   :  { %3254 = vst [vmem:[#allocation32_spill] sm:$0xff] %v2263_v18  ;;  %v479_v12 = vpop.permute.xlu0 %478  ;;  %v2276_v31 = vpop.permute.xlu1 %474  ;;  %v448_v49 = vadd.f32 %v442_v61, %v399_v26  ;;  %v610_v60 = vsel %vm606_vm2, %v2159_v20, %v2148_v1  ;;  %v656_v1 = vsel %vm655_vm4, %v2153_v6, %v2164_v16  ;;  %v613_v20 = vmul.f32 %v607_v54, %v2263_v18 }
 0x18f   :  { %v485_v58 = vsel %vm484_vm14, %v2157_v19, %v479_v12  ;;  %v488_v62 = vsel %vm484_vm14, %v479_v12, %v2157_v19  ;;  %v449_v42 = vadd.f32 %v443_v30, %v400_v39  ;;  %v2298_v19 = vsel %vm2272_vm15, 1.0, %v1827_v14 }
 0x190   :  { %v491_v32 = vmul.f32 %v488_v62, %v2247_v50  ;;  %v492_v46 = vmul.f32 %v485_v58, %v2251_v2  ;;  %v2322_v62 = vmul.f32 %v2294_v9, %v2116_v51 }
 0x192   :  { %v497_v39 = vadd.f32 %v491_v32, %v448_v49  ;;  %v498_v61 = vadd.f32 %v492_v46, %v449_v42  ;;  %v552_v30 = vpop.permute.xlu0 %551  ;;  %v2301_v26 = vpop.permute.xlu1 %547  ;;  %v614_v49 = vmul.f32 %v610_v60, %v2267_v3 }
 0x193   :  { %v558_v63 = vsel %vm557_vm3, %v2144_v59, %v552_v30  ;;  %v561_v42 = vsel %vm557_vm3, %v552_v30, %v2144_v59  ;;  %v659_v59 = vsel %vm655_vm4, %v2164_v16, %v2153_v6  ;;  %v662_v30 = vmul.f32 %v656_v1, %v2116_v51 }
 0x194   :  { %v521_v14 = vadd.f32 %v515_v48, %v497_v39  ;;  %v522_v29 = vadd.f32 %v516_v22, %v498_v61  ;;  %v564_v12 = vmul.f32 %v558_v63, %v2255_v41  ;;  %v565_v58 = vmul.f32 %v561_v42, %v2259_v7 }
 0x195   :  { %v2338_v39 = vmul.f32 %v2190_v11, %v2124_v52  ;;  %v2342_v61 = vmul.f32 %v2298_v19, %v2124_v52  ;;  %v663_v54 = vmul.f32 %v659_v59, %v2322_v62  ;;  %v2358_v59 = vmul.f32 %v2177_v10, %v2012_v13 }
 0x196   :  { %v570_v32 = vadd.f32 %v564_v12, %v521_v14  ;;  %v571_v46 = vadd.f32 %v565_v58, %v522_v29  ;;  %v699_v48 = vpop.permute.xlu0 %698  ;;  %v2334_v22 = vpop.permute.xlu1 %694 }
 0x197   :  { %v705_v16 = vsel %vm704_vm5, %v2162_v40, %v699_v48  ;;  %v708_v6 = vsel %vm704_vm5, %v699_v48, %v2162_v40 }
 0x198   :  { %v619_v60 = vadd.f32 %v613_v20, %v570_v32  ;;  %v620_v63 = vadd.f32 %v614_v49, %v571_v46  ;;  %v711_v29 = vmul.f32 %v705_v16, %v2338_v39  ;;  %v712_v52 = vmul.f32 %v708_v6, %v2342_v61 }
 0x199   :  { %v2368_v32 = vmul.f32 %v2174_v36, %v2022_v17  ;;  %v2382_v16 = vmul.f32 %v2187_v15, %v2044_v28 }
 0x19a   :  { %v668_v42 = vadd.f32 %v662_v30, %v619_v60  ;;  %v669_v14 = vadd.f32 %v663_v54, %v620_v63  ;;  %v597_v12 = vpop.permute.xlu0 %596  ;;  %v334_v58 = vpop.permute.xlu1 %333 }
 0x19b   :  { %v339_v6 = vsel %vm337_vm11, %v2168_v43, %v334_v58 }
 0x19c   :  { %v717_v3 = vadd.f32 %v711_v29, %v668_v42  ;;  %v718_v18 = vadd.f32 %v712_v52, %v669_v14 }
 0x19e   :  { %v735_v7 = vmul.f32 %v2130_v55, %v717_v3  ;;  %v736_v40 = vmul.f32 %v2130_v55, %v718_v18  ;;  %v646_v48 = vpop.permute.xlu0 %645  ;;  %v383_v1 = vpop.permute.xlu1 %382  ;;  %v2372_v18 = vmul.f32 %v2180_v23, %v2012_v13  ;;  %v342_v13 = vsel %vm337_vm11, %v334_v58, %v2168_v43  ;;  %v3268_v55 = vld [vmem:[#allocation17_spill] sm:$0xff] }
 0x19f   :  { %v388_v20 = vsel %vm386_vm9, %v2185_v27, %v383_v1  ;;  %v391_v49 = vsel %vm386_vm9, %v383_v1, %v2185_v27  ;;  %v2386_v27 = vmul.f32 %v2200_v53, %v2044_v28  ;;  %v346_v14 = vmul.f32 %v342_v13, %v2358_v59 }
 0x1a0   :  { %v2375_v3 = vadd.f32 %v2138_v57, %v735_v7  ;;  %v2378_v46 = vadd.f32 %v2138_v57, %v736_v40  ;;  %v395_v7 = vmul.f32 %v391_v49, %v2368_v32  ;;  %v396_v30 = vmul.f32 %v388_v20, %v2022_v17 }
 0x1a1   :  { %v347_v43 = vmul.f32 %v339_v6, %v2372_v18  ;;  %v2410_v40 = vmul.f32 %v2183_v25, %v2066_v37  ;;  %v2414_v1 = vmul.f32 %v2180_v23, %v2066_v37  ;;  %v2426_v37 = vmul.f32 %v2190_v11, %v2054_v33 }
 0x1a2   :  { %v432_v54 = vpop.permute.xlu1 %431  ;;  %v1580_v60 = vmul.f32 -1.442695, %v2375_v3  ;;  %v1581_v63 = vmul.f32 -1.442695, %v2378_v46  ;;  %v603_v29 = vpop.permute.xlu0 %602  ;;  %v401_v20 = vadd.f32 %v395_v7, %v346_v14  ;;  %v2430_v7 = vmul.f32 %v2200_v53, %v2054_v33 }
 0x1a3   :  { %v437_v28 = vsel %vm435_vm13, %v2231_v4, %v432_v54  ;;  %v440_v42 = vsel %vm435_vm13, %v432_v54, %v2231_v4  ;;  %v402_v4 = vadd.f32 %v396_v30, %v347_v43  ;;  %v2434_v30 = vmul.f32 %v2183_v25, %v2083_v44 }
 0x1a4   :  { %v444_v52 = vmul.f32 %v440_v42, %v2382_v16  ;;  %v445_v58 = vmul.f32 %v437_v28, %v2386_v27  ;;  %1697 = vpow2.f32 %v1580_v60  ;;  %v518_v14 = vmul.f32 %v2089_v45, %v2038_v24 }
 0x1a5   :  { %1699 = vpow2.f32 %v1581_v63  ;;  %v517_v63 = vmul.f32 %v2089_v45, %v1995_v0  ;;  %v608_v33 = vsel %vm606_vm2, %v597_v12, %v603_v29 }
 0x1a6   :  { %v481_v49 = vpop.permute.xlu1 %480  ;;  %v450_v54 = vadd.f32 %v444_v52, %v401_v20  ;;  %v451_v28 = vadd.f32 %v445_v58, %v402_v4  ;;  %v652_v43 = vpop.permute.xlu0 %651  ;;  %v611_v4 = vsel %vm606_vm2, %v603_v29, %v597_v12 }
 0x1a7   :  { %v486_v6 = vsel %vm484_vm14, %v2276_v31, %v481_v49  ;;  %v489_v13 = vsel %vm484_vm14, %v481_v49, %v2276_v31  ;;  %v2438_v31 = vmul.f32 %v2227_v35, %v2083_v44  ;;  %v657_v12 = vsel %vm655_vm4, %v646_v48, %v652_v43 }
 0x1a8   :  { %v493_v60 = vmul.f32 %v489_v13, %v2410_v40  ;;  %v494_v42 = vmul.f32 %v486_v6, %v2414_v1  ;;  %v660_v29 = vsel %vm655_vm4, %v652_v43, %v646_v48 }
 0x1aa   :  { %v499_v52 = vadd.f32 %v493_v60, %v450_v54  ;;  %v500_v58 = vadd.f32 %v494_v42, %v451_v28  ;;  %v554_v20 = vpop.permute.xlu1 %553  ;;  %v2458_v54 = vmul.f32 %v2294_v9, %v2102_v47  ;;  %v615_v28 = vmul.f32 %v608_v33, %v2434_v30 }
 0x1ab   :  { %v559_v44 = vsel %vm557_vm3, %v2301_v26, %v554_v20  ;;  %v562_v0 = vsel %vm557_vm3, %v554_v20, %v2301_v26  ;;  %v616_v26 = vmul.f32 %v611_v4, %v2438_v31  ;;  %v2476_v4 = vmul.f32 %v2190_v11, %v2118_v8 }
 0x1ac   :  { %v523_v49 = vadd.f32 %v517_v63, %v499_v52  ;;  %v524_v24 = vadd.f32 %v518_v14, %v500_v58  ;;  %v566_v6 = vmul.f32 %v559_v44, %v2426_v37  ;;  %v567_v13 = vmul.f32 %v562_v0, %v2430_v7 }
 0x1ad   :  { %v664_v58 = vmul.f32 %v657_v12, %v2102_v47  ;;  %v665_v20 = vmul.f32 %v660_v29, %v2458_v54  ;;  %3258 = vst [vmem:[#allocation34_spill] sm:$0xff] %v2476_v4 }
 0x1ae   :  { %v572_v60 = vadd.f32 %v566_v6, %v523_v49  ;;  %v573_v42 = vadd.f32 %v567_v13, %v524_v24  ;;  %v701_v63 = vpop.permute.xlu1 %700  ;;  %v1698_v14 = vpop.eup %1697  ;;  %v2480_v49 = vmul.f32 %v2298_v19, %v2118_v8 }
 0x1af   :  { %v1700_v52 = vpop.eup %1699  ;;  %v706_v57 = vsel %vm704_vm5, %v2334_v22, %v701_v63  ;;  %v709_v48 = vsel %vm704_vm5, %v701_v63, %v2334_v22  ;;  %v777_v43 = vadd.f32 1.0, %v1698_v14 }
 0x1b0   :  { %v621_v44 = vadd.f32 %v615_v28, %v572_v60  ;;  %v622_v0 = vadd.f32 %v616_v26, %v573_v42  ;;  %v778_v33 = vadd.f32 1.0, %v1700_v52  ;;  %3259 = vst [vmem:[#allocation35_spill] sm:$0xff] %v2480_v49  ;;  %v713_v12 = vmul.f32 %v706_v57, %v2476_v4  ;;  %v379_v60 = vpop.permute.xlu0 %378 }
 0x1b1   :  { %1701 = vrcp.f32 %v777_v43  ;;  %v714_v29 = vmul.f32 %v709_v48, %v2480_v49 }
 0x1b2   :  { %v670_v24 = vadd.f32 %v664_v58, %v621_v44  ;;  %v671_v6 = vadd.f32 %v665_v20, %v622_v0  ;;  %v330_v13 = vpop.permute.xlu1 %329  ;;  %1703 = vrcp.f32 %v778_v33 }
 0x1b4   :  { %v719_v22 = vadd.f32 %v713_v12, %v670_v24  ;;  %v720_v28 = vadd.f32 %v714_v29, %v671_v6 }
 0x1b6   :  { %v428_v26 = vpop.permute.xlu1 %427  ;;  %v737_v42 = vmul.f32 %v2132_v56, %v719_v22  ;;  %v738_v63 = vmul.f32 %v2132_v56, %v720_v28 }
 0x1ba   :  { %v477_v14 = vpop.permute.xlu1 %476 }
 0x1bb   :  { %v2486_v8 = vpop.permute.xlu0 %746  ;;  %v1702_v57 = vpop.eup %1701 }
 0x1bc   :  { %3260 = vst [vmem:[#allocation36_spill] sm:$0xff] %v2486_v8  ;;  %v755_v52 = vadd.f32 %v2486_v8, %v737_v42  ;;  %v2490_v58 = vadd.f32 %v2486_v8, %v738_v63  ;;  %v1704_v20 = vpop.eup %1703  ;;  %v2493_v0 = vmul.f32 %v1702_v57, %v2375_v3 }
 0x1bd   :  { %v2497_v33 = vmul.f32 %v1704_v20, %v2378_v46  ;;  %v2505_v46 = vmul.f32 %v2174_v36, %v2030_v21  ;;  %v1586_v36 = vld [vmem:[#allocation2] ss:$0 sm:$0xff] }
 0x1be   :  { %v550_v44 = vpop.permute.xlu1 %549  ;;  %v1582_v48 = vmul.f32 -1.442695, %v755_v52  ;;  %v1583_v43 = vmul.f32 -1.442695, %v2490_v58 }
 0x1bf   :  { %v801_v24 = vadd.f32 %v2497_v33, %v2493_v0  ;;  %3261 = vst [vmem:[#allocation37_spill] sm:$0xff] %v2505_v46 }
 0x1c0   :  { %1705 = vpow2.f32 %v1582_v48 }
 0x1c1   :  { %1707 = vpow2.f32 %v1583_v43  ;;  %802 = vadd.xlane.f32.xlu1 %v801_v24  ;;  %v3262_v43 = vld [vmem:[#allocation12_spill] sm:$0xff] }
 0x1c2   :  { %v599_v6 = vpop.permute.xlu1 %598  ;;  %v2515_v24 = vmul.f32 %v2177_v10, %v3262_v43  ;;  %v556_v10 = vpop.permute.xlu0 %555 }
 0x1c4   :  { %3263 = vst [vmem:[#allocation12_spill] sm:$0xff] %v2515_v24 }
 0x1c6   :  { %v2501_v12 = vpop.permute.xlu1 %647 }
 0x1ca   :  { %v1706_v29 = vpop.eup %1705  ;;  %v336_v22 = vpop.permute.xlu1 %335 }
 0x1cb   :  { %v1708_v28 = vpop.eup %1707  ;;  %v779_v3 = vadd.f32 1.0, %v1706_v29  ;;  %v343_v48 = vsel %vm337_vm11, %v336_v22, %v330_v13  ;;  %v340_v29 = vsel %vm337_vm11, %v330_v13, %v336_v22 }
 0x1cc   :  { %v780_v42 = vadd.f32 1.0, %v1708_v28  ;;  %v348_v13 = vmul.f32 %v343_v48, %v2515_v24  ;;  %v2547_v48 = vmul.f32 %v2180_v23, %v3268_v55 }
 0x1cd   :  { %1709 = vrcp.f32 %v779_v3  ;;  %v2522_v3 = vmul.f32 %v2180_v23, %v3262_v43  ;;  %v605_v23 = vpop.permute.xlu0 %604 }
 0x1ce   :  { %v385_v63 = vpop.permute.xlu1 %384  ;;  %1711 = vrcp.f32 %v780_v42  ;;  %v3265_v42 = vld [vmem:[#allocation14_spill] sm:$0xff]  ;;  %3270 = vst [vmem:[#allocation40_spill] sm:$0xff] %v2547_v48 }
 0x1cf   :  { %v389_v57 = vsel %vm386_vm9, %v379_v60, %v385_v63  ;;  %v392_v20 = vsel %vm386_vm9, %v385_v63, %v379_v60  ;;  %3264 = vst [vmem:[#allocation38_spill] sm:$0xff] %v2522_v3  ;;  %v2526_v60 = vmul.f32 %v2187_v15, %v3265_v42  ;;  %v2530_v63 = vmul.f32 %v2200_v53, %v3265_v42 }
 0x1d0   :  { %v397_v28 = vmul.f32 %v392_v20, %v2505_v46  ;;  %v398_v8 = vmul.f32 %v389_v57, %v2030_v21  ;;  %v349_v43 = vmul.f32 %v340_v29, %v2522_v3  ;;  %v2543_v57 = vmul.f32 %v2183_v25, %v3268_v55  ;;  %v3271_v21 = vld [vmem:[#allocation20_spill] sm:$0xff] }
 0x1d1   :  { %3266 = vst [vmem:[#allocation14_spill] sm:$0xff] %v2526_v60  ;;  %3267 = vst [vmem:[#allocation39_spill] sm:$0xff] %v2530_v63 }
 0x1d2   :  { %v434_v56 = vpop.permute.xlu1 %433  ;;  %833 = vrot.lane.b32.xlu1 %v1586_v36, %s1828_s5  ;;  %v403_v42 = vadd.f32 %v397_v28, %v348_v13  ;;  %3269 = vst [vmem:[#allocation17_spill] sm:$0xff] %v2543_v57 }
 0x1d3   :  { %v438_v22 = vsel %vm435_vm13, %v428_v26, %v434_v56  ;;  %v441_v20 = vsel %vm435_vm13, %v434_v56, %v428_v26  ;;  %v2551_v56 = vmul.f32 %v2190_v11, %v3271_v21  ;;  %v404_v26 = vadd.f32 %v398_v8, %v349_v43 }
 0x1d4   :  { %v446_v15 = vmul.f32 %v441_v20, %v2526_v60  ;;  %v447_v46 = vmul.f32 %v438_v22, %v2530_v63  ;;  %v2555_v22 = vmul.f32 %v2200_v53, %v3271_v21  ;;  %v3274_v60 = vld [vmem:[#allocation19_spill] sm:$0xff]  ;;  %v560_v53 = vsel %vm557_vm3, %v550_v44, %v556_v10 }
 0x1d5   :  { %3272 = vst [vmem:[#allocation20_spill] sm:$0xff] %v2551_v56  ;;  %v2567_v21 = vmul.f32 %v2183_v25, %v3274_v60  ;;  %v2582_v25 = vmul.f32 %v2227_v35, %v3274_v60 }
 0x1d6   :  { %v483_v29 = vpop.permute.xlu1 %482  ;;  %3273 = vst [vmem:[#allocation41_spill] sm:$0xff] %v2555_v22  ;;  %v452_v28 = vadd.f32 %v446_v15, %v403_v42  ;;  %v453_v63 = vadd.f32 %v447_v46, %v404_v26  ;;  %v563_v15 = vsel %vm557_vm3, %v556_v10, %v550_v44  ;;  %v3276_v46 = vld [vmem:[#allocation15_spill] sm:$0xff]  ;;  %v3277_v42 = vld [vmem:[#allocation16_spill] sm:$0xff]  ;;  %v568_v10 = vmul.f32 %v560_v53, %v2551_v56 }
 0x1d7   :  { %v1710_v20 = vpop.eup %1709  ;;  %v487_v36 = vsel %vm484_vm14, %v477_v14, %v483_v29  ;;  %v490_v13 = vsel %vm484_vm14, %v483_v29, %v477_v14  ;;  %3275 = vst [vmem:[#allocation19_spill] sm:$0xff] %v2567_v21  ;;  %v519_v26 = vmul.f32 %v3277_v42, %v3276_v46  ;;  %v3278_v29 = vld [vmem:[#allocation18_spill] sm:$0xff]  ;;  %3279 = vst [vmem:[#allocation15_spill] sm:$0xff] %v2582_v25 }
 0x1d8   :  { %v1712_v55 = vpop.eup %1711  ;;  %v495_v3 = vmul.f32 %v490_v13, %v2543_v57  ;;  %v496_v8 = vmul.f32 %v487_v36, %v2547_v48  ;;  %v2563_v43 = vmul.f32 %v1710_v20, %v755_v52  ;;  %v520_v52 = vmul.f32 %v3277_v42, %v3278_v29  ;;  %v3313_v42 = vld [vmem:[#allocation27_spill] sm:$0xff] }
 0x1d9   :  { %v2574_v14 = vmul.f32 %v1712_v55, %v2490_v58  ;;  %v609_v48 = vsel %vm606_vm2, %v599_v6, %v605_v23  ;;  %v612_v58 = vsel %vm606_vm2, %v605_v23, %v599_v6  ;;  %v569_v55 = vmul.f32 %v563_v15, %v2555_v22 }
 0x1da   :  { %v501_v20 = vadd.f32 %v495_v3, %v452_v28  ;;  %v502_v36 = vadd.f32 %v496_v8, %v453_v63  ;;  %v697_v13 = vpop.permute.xlu1 %696  ;;  %v3280_v28 = vld [vmem:[#allocation21_spill] sm:$0xff]  ;;  %v617_v60 = vmul.f32 %v609_v48, %v2567_v21  ;;  %v618_v8 = vmul.f32 %v612_v58, %v2582_v25  ;;  %v3282_v48 = vld [vmem:[#allocation22_spill] sm:$0xff] }
 0x1db   :  { %v804_v44 = vadd.f32 %v2574_v14, %v2563_v43  ;;  %v2594_v35 = vmul.f32 %v2294_v9, %v3280_v28 }
 0x1dc   :  { %v525_v3 = vadd.f32 %v519_v26, %v501_v20  ;;  %v526_v63 = vadd.f32 %v520_v52, %v502_v36  ;;  %v2608_v20 = vmul.f32 %v2190_v11, %v3282_v48  ;;  %v2612_v36 = vmul.f32 %v2298_v19, %v3282_v48 }
 0x1dd   :  { %805 = vadd.xlane.f32.xlu0 %v804_v44  ;;  %3281 = vst [vmem:[#allocation18_spill] sm:$0xff] %v2594_v35 }
 0x1de   :  { %v574_v46 = vadd.f32 %v568_v10, %v525_v3  ;;  %v654_v6 = vpop.permute.xlu1 %653  ;;  %v575_v23 = vadd.f32 %v569_v55, %v526_v63  ;;  %3283 = vst [vmem:[#allocation22_spill] sm:$0xff] %v2608_v20  ;;  %3284 = vst [vmem:[#allocation42_spill] sm:$0xff] %v2612_v36 }
 0x1df   :  { %v658_v53 = vsel %vm655_vm4, %v2501_v12, %v654_v6  ;;  %v661_v15 = vsel %vm655_vm4, %v654_v6, %v2501_v12  ;;  %v2622_v6 = vpop.permute.xlu0 %750 }
 0x1e0   :  { %v623_v26 = vadd.f32 %v617_v60, %v574_v46  ;;  %v624_v29 = vadd.f32 %v618_v8, %v575_v23  ;;  %v666_v9 = vmul.f32 %v658_v53, %v3280_v28  ;;  %v667_v52 = vmul.f32 %v661_v15, %v2594_v35  ;;  %v3285_v8 = vld [vmem:[#allocation26_spill] sm:$0xff]  ;;  %3286 = vst [vmem:[#allocation43_spill] sm:$0xff] %v2622_v6 }
 0x1e2   :  { %v703_v58 = vpop.permute.xlu1 %702  ;;  %v672_v10 = vadd.f32 %v666_v9, %v623_v26  ;;  %v673_v55 = vadd.f32 %v667_v52, %v624_v29 }
 0x1e3   :  { %v707_v44 = vsel %vm704_vm5, %v697_v13, %v703_v58  ;;  %v710_v12 = vsel %vm704_vm5, %v703_v58, %v697_v13 }
 0x1e4   :  { %v715_v3 = vmul.f32 %v707_v44, %v2608_v20  ;;  %v716_v63 = vmul.f32 %v710_v12, %v2612_v36 }
 0x1e6   :  { %v721_v60 = vadd.f32 %v715_v3, %v672_v10  ;;  %v722_v11 = vadd.f32 %v716_v63, %v673_v55  ;;  %v2635_v55 = vld [vmem:[%s3134_s3] sm:$0xff]  ;;  %v2642_v3 = vld [vmem:[%s3134_s3 + $0x8] sm:$0xff] }
 0x1e7   :  { %3287 = vst [vmem:[#allocation44_spill] sm:$0xff] %v2635_v55  ;;  %858 = vrot.lane.b32.xlu1 %v2635_v55, %s1829_s24  ;;  %3288 = vst [vmem:[#allocation45_spill] sm:$0xff] %v2642_v3 }
 0x1e8   :  { %v739_v46 = vmul.f32 %v3285_v8, %v721_v60  ;;  %v740_v19 = vmul.f32 %v3285_v8, %v722_v11 }
 0x1ea   :  { %v757_v23 = vadd.f32 %v2622_v6, %v739_v46  ;;  %v758_v53 = vadd.f32 %v2622_v6, %v740_v19 }
 0x1eb   :  { %860 = vrot.lane.b32.xlu1 %v2642_v3, %s1829_s24 }
 0x1ec   :  { %v1584_v15 = vmul.f32 -1.442695, %v757_v23  ;;  %v1585_v13 = vmul.f32 -1.442695, %v758_v53 }
 0x1ee   :  { %1713 = vpow2.f32 %v1584_v15 }
 0x1ef   :  { %1715 = vpow2.f32 %v1585_v13 }
 0x1f8   :  { %v1714_v26 = vpop.eup %1713 }
 0x1f9   :  { %v1716_v29 = vpop.eup %1715  ;;  %v781_v9 = vadd.f32 1.0, %v1714_v26 }
 0x1fa   :  { %v782_v52 = vadd.f32 1.0, %v1716_v29  ;;  %v2653_v29 = vld [vmem:[%s3134_s3 + $0x10] sm:$0xff] }
 0x1fb   :  { %1717 = vrcp.f32 %v781_v9  ;;  %3289 = vst [vmem:[#allocation46_spill] sm:$0xff] %v2653_v29 }
 0x1fc   :  { %1719 = vrcp.f32 %v782_v52 }
 0x205   :  { %v1718_v48 = vpop.eup %1717 }
 0x206   :  { %v1720_v58 = vpop.eup %1719  ;;  %v2626_v44 = vmul.f32 %v1718_v48, %v757_v23 }
 0x207   :  { %v2628_v12 = vmul.f32 %v1720_v58, %v758_v53 }
 0x209   :  { %v807_v10 = vadd.f32 %v2628_v12, %v2626_v44 }
 0x20b   :  { %808 = vadd.xlane.f32.xlu0 %v807_v10 }
 0x24e   :  { %v803_v60 = vpop.xlane.xlu1 %802 }
 0x24f   :  { %v810_v46 = vmul.f32 0.00390625, %v803_v60 }
 0x251   :  { %v813_v23 = vmul.f32 %v2635_v55, %v810_v46 }
 0x253   :  { %v817_v26 = vsel %vm816_vm6, %v813_v23, 0.0 }
 0x26a   :  { %v806_v63 = vpop.xlane.xlu0 %805 }
 0x26b   :  { %v811_v11 = vmul.f32 0.00390625, %v806_v63 }
 0x26d   :  { %v814_v19 = vmul.f32 %v2642_v3, %v811_v11 }
 0x26f   :  { %v818_v15 = vsel %vm816_vm6, %v814_v19, 0.0  ;;  %v2657_v19 = vpop.permute.xlu1 %833 }
 0x270   :  { %v819_v52 = vadd.f32 %v818_v15, %v817_v26  ;;  %3290 = vst [vmem:[#allocation47_spill] sm:$0xff] %v2657_v19 }
 0x298   :  { %v809_v53 = vpop.xlane.xlu0 %808 }
 0x299   :  { %v812_v13 = vmul.f32 0.00390625, %v809_v53 }
 0x29b   :  { %v815_v9 = vmul.f32 %v2653_v29, %v812_v13  ;;  %v3291_v13 = vlaneseq }
 0x29d   :  { %v820_v48 = vsel %vm816_vm6, %v815_v9, 0.0  ;;  %v2661_v15 = vshrl.u32 %v3291_v13, 7 }
 0x29e   :  { %v821_v58 = vadd.f32 %v820_v48, %v819_v52 }
 0x29f   :  { %3292 = vst [vmem:[#allocation48_spill] sm:$0xff] %v2661_v15  ;;  %v3195_v26 = vsub.s32 0, %v2661_v15 }
 0x2a0   :  { %v822_v10 = vrot.slane %v821_v58, 4 }
 0x2a2   :  { %v823_v63 = vadd.f32 %v822_v10, %v821_v58  ;;  %v3194_v58 = vmov 15  }
 0x2a3   :  { %1668 = vset.pattern.permute.xlu1 %v3194_v58  ;;  %1669 = vset.pattern.permute.xlu0 %v3194_v58 }
 0x2a4   :  { %v824_v60 = vrot.slane %v823_v63, 2 }
 0x2a6   :  { %v825_v11 = vadd.f32 %v824_v60, %v823_v63 }
 0x2a8   :  { %v826_v46 = vrot.slane %v825_v11, 1 }
 0x2aa   :  { %v827_v53 = vadd.f32 %v826_v46, %v825_v11 }
 0x2ac   :  { %v836_v23 = vadd.f32 %v2657_v19, %v827_v53 }
 0x2ae   :  { %v1587_v6 = vmul.f32 -1.442695, %v836_v23 }
 0x2b0   :  { %1721 = vpow2.f32 %v1587_v6 }
 0x2ba   :  { %v1722_v8 = vpop.eup %1721 }
 0x2bb   :  { %v840_v36 = vadd.f32 1.0, %v1722_v8 }
 0x2bd   :  { %1723 = vrcp.f32 %v840_v36  ;;  %v2671_v36 = vpop.permute.xlu1 %858 }
 0x2be   :  { %3293 = vst [vmem:[#allocation49_spill] sm:$0xff] %v2671_v36 }
 0x2c1   :  { %v2673_v6 = vpop.permute.xlu1 %860 }
 0x2c2   :  { %3294 = vst [vmem:[#allocation50_spill] sm:$0xff] %v2673_v6 }
 0x2c7   :  { %v1724_v9 = vpop.eup %1723 }
 0x2c8   :  { %v843_v52 = vmul.f32 %v1724_v9, %v836_v23 }
 0x2ca   :  { %v847_v48 = vrot.slane %v843_v52, %v3195_v26 }
 0x2cc   :  { %849 = vrot.lane.b32.xlu0 %v847_v48, %s1825_s18 }
 0x2d0   :  { %862 = vrot.lane.b32.xlu0 %v2653_v29, %s1829_s24 }
 0x33e   :  { %v850_v8 = vpop.permute.xlu0 %849 }
 0x33f   :  { %v852_v10 = vmul.f32 %v2635_v55, %v850_v8  ;;  %v853_v63 = vmul.f32 %v2642_v3, %v850_v8  ;;  %v854_v60 = vmul.f32 %v2653_v29, %v850_v8 }
 0x341   :  { %v867_v11 = vadd.f32 %v2671_v36, %v852_v10  ;;  %v868_v46 = vadd.f32 %v2673_v6, %v853_v63 }
 0x342   :  { %v2680_v53 = vpop.permute.xlu0 %862 }
 0x343   :  { %3295 = vst [vmem:[#allocation51_spill] sm:$0xff] %v2680_v53  ;;  %v1588_v23 = vmul.f32 -1.442695, %v867_v11  ;;  %v1589_v13 = vmul.f32 -1.442695, %v868_v46  ;;  %v869_v9 = vadd.f32 %v2680_v53, %v854_v60 }
 0x345   :  { %1725 = vpow2.f32 %v1588_v23  ;;  %v1590_v52 = vmul.f32 -1.442695, %v869_v9 }
 0x346   :  { %1727 = vpow2.f32 %v1589_v13 }
 0x347   :  { %1729 = vpow2.f32 %v1590_v52 }
 0x34f   :  { %v1726_v48 = vpop.eup %1725 }
 0x350   :  { %v1728_v58 = vpop.eup %1727  ;;  %v879_v26 = vadd.f32 1.0, %v1726_v48 }
 0x351   :  { %v1730_v15 = vpop.eup %1729  ;;  %v880_v19 = vadd.f32 1.0, %v1728_v58 }
 0x352   :  { %1731 = vrcp.f32 %v879_v26  ;;  %v881_v8 = vadd.f32 1.0, %v1730_v15 }
 0x353   :  { %1733 = vrcp.f32 %v880_v19 }
 0x354   :  { %1735 = vrcp.f32 %v881_v8  ;;  %v2692_v8 = vld [vmem:[%s3132_s0 + $0x18] sm:$0xff] }
 0x355   :  { %3296 = vst [vmem:[#allocation52_spill] sm:$0xff] %v2692_v8 }
 0x35c   :  { %v1732_v10 = vpop.eup %1731 }
 0x35d   :  { %v1734_v63 = vpop.eup %1733  ;;  %890 = vperm.xlu1 %1668, %v1732_v10  }
 0x35e   :  { %895 = vperm.xlu0 %1669, %v1734_v63   ;;  %v1736_v11 = vpop.eup %1735 }
 0x361   :  { %900 = vperm.xlu1 %1668, %v1736_v11  }
 0x3dc   :  { %v891_v60 = vpop.permute.xlu1 %890 }
 0x3dd   :  { %v903_v46 = vmul.f32 %v891_v60, %v2493_v0  ;;  %v904_v23 = vmul.f32 %v891_v60, %v2497_v33  ;;  %v896_v13 = vpop.permute.xlu0 %895  ;;  %v2697_v0 = vld [vmem:[%s3132_s0 + $0x10] sm:$0xff]  ;;  %v3299_v60 = vmov 0  }
 0x3de   :  { %v905_v9 = vmul.f32 %v896_v13, %v2563_v43  ;;  %v906_v58 = vmul.f32 %v896_v13, %v2574_v14  ;;  %3297 = vst [vmem:[#allocation53_spill] sm:$0xff] %v2697_v0  ;;  %v36_v14 = vld [vmem:[%s3136_s2] sm:$0xff] }
 0x3df   :  { %v2708_v63 = vpack.c.bf16 %v36_v14, %v36_v14 }
 0x3e0   :  { %v901_v26 = vpop.permute.xlu1 %900  ;;  %v910_v15 = vpack.c.bf16 %v906_v58, %v904_v23  ;;  %v909_v19 = vpack.c.bf16 %v905_v9, %v903_v46  ;;  %v3300_v46 = vld [vmem:[#allocation3_spill] sm:$0xff]  ;;  %v3301_v23 = vld [vmem:[#allocation4_spill] sm:$0xff] }
 0x3e1   :  { %v907_v52 = vmul.f32 %v901_v26, %v2626_v44  ;;  %v908_v48 = vmul.f32 %v901_v26, %v2628_v12  ;;  %v985_v44 = vpack.c.bf16 %v2692_v8, %v2692_v8  ;;  %v984_v12 = vpack.c.bf16 %v2697_v0, %v2697_v0  ;;  %3298 = vst [vmem:[#allocation54_spill] sm:$0xff] %v2708_v63 }
 0x3e2   :  { %923 = vmatprep.subr.bf16.mxu1 %v910_v15 }
 0x3e3   :  { %v911_v33 = vpack.c.bf16 %v907_v52, %v907_v52  ;;  %v912_v43 = vpack.c.bf16 %v908_v48, %v908_v48  ;;  %924 = vmatpush1.bf16.msra.mxu1 %v909_v19  ;;  %v987_v11 = vsel %vm168_vm0, %v984_v12, 0  ;;  %v3304_v19 = vld [vmem:[#allocation6_spill] sm:$0xff] }
 0x3e5   :  { %1591 = vmatprep.subr.msk.bf16.mxu1 %vm168_vm0, %v912_v43  ;;  %v918_v10 = vsel %vm168_vm0, %v911_v33, 0  ;;  %v3305_v43 = vld [vmem:[#allocation7_spill] sm:$0xff] }
 0x3e7   :  { %926 = vmatpush1.bf16.msra.mxu1 %v918_v10 }
 0x3e8   :  { %1595 = vmatprep.subr.msk.bf16.mxu1 %vm168_vm0, %v985_v44  ;;  %v3306_v44 = vld [vmem:[#allocation8_spill] sm:$0xff] }
 0x3ea   :  { %1592 = vmatmul.mubr.msk.bf16.vlgmr.msra.gmra.mrb[0].mxu1 %vm913_vm7, %v2708_v63 }
 0x3eb   :  { %993 = vmatpush1.bf16.msra.mxu1 %v987_v11  ;;  %1024 = vmatprep.mubr.bf16.mxu1 %v3299_v60 }
 0x3f2   :  { %1596 = vmatmul.mubr.msk.bf16.vlgmr.msra.gmra.mrb[4].mxu1 %vm161_vm1, %v3300_v46  ;;  %v3307_v46 = vld [vmem:[#allocation9_spill] sm:$0xff] }
 0x3f3   :  { %1034 = vmatprep.mubr.bf16.mxu1 %v3299_v60 }
 0x3fa   :  { %1597 = vmatmul.mubr.msk.bf16.gmra.mrb[8].mxu1 %vm161_vm1, %v3301_v23 }
 0x4bd   :  { %v2720_v13 = vpop.f32.mrb[0].mxu1 }
 0x4be   :  { %3302 = vst [vmem:[#allocation3_spill] sm:$0xff] %v2720_v13  ;;  %v2722_v9 = vpop.f32.mrb[1].mxu1 }
 0x4bf   :  { %3303 = vst [vmem:[#allocation4_spill] sm:$0xff] %v2722_v9  ;;  %v961_v58 = vpop.f32.mrb[2].mxu1 }
 0x4c0   :  { %v962_v26 = vpop.f32.mrb[3].mxu1 }
 0x4c5   :  { %v1026_v15 = vpop.f32.mrb[4].mxu1 }
 0x4c6   :  { %v1043_v52 = vmul.f32 %v1026_v15, %v3304_v19  ;;  %v1028_v48 = vpop.f32.mrb[5].mxu1 }
 0x4c7   :  { %v1030_v33 = vpop.f32.mrb[6].mxu1 }
 0x4c8   :  { %v1049_v14 = vadd.f32 %v1043_v52, %v3305_v43  ;;  %v1045_v12 = vmul.f32 %v1030_v33, %v3306_v44  ;;  %v1032_v10 = vpop.f32.mrb[7].mxu1  ;;  %v1044_v52 = vmul.f32 %v1028_v48, %v3304_v19  ;;  %v3308_v19 = vld [vmem:[#allocation5_spill] sm:$0xff] }
 0x4c9   :  { %v1046_v33 = vmul.f32 %v1032_v10, %v3306_v44 }
 0x4ca   :  { %v1598_v11 = vmul.f32 -1.442695, %v1049_v14  ;;  %v1051_v8 = vadd.f32 %v1045_v12, %v3307_v46  ;;  %v1050_v53 = vadd.f32 %v1044_v52, %v3305_v43 }
 0x4cb   :  { %v1052_v12 = vadd.f32 %v1046_v33, %v3307_v46 }
 0x4cc   :  { %1737 = vpow2.f32 %v1598_v11  ;;  %v1600_v23 = vmul.f32 -1.442695, %v1051_v8  ;;  %v1599_v11 = vmul.f32 -1.442695, %v1050_v53 }
 0x4cd   :  { %v1036_v0 = vpop.f32.mrb[8].mxu1 }
 0x4ce   :  { %1739 = vpow2.f32 %v1600_v23  ;;  %v1038_v63 = vpop.f32.mrb[9].mxu1  ;;  %v1047_v48 = vmul.f32 %v1036_v0, %v3308_v19 }
 0x4cf   :  { %v1040_v58 = vpop.f32.mrb[10].mxu1  ;;  %v1048_v43 = vmul.f32 %v1038_v63, %v3308_v19 }
 0x4d0   :  { %v1041_v26 = vpop.f32.mrb[11].mxu1  ;;  %v1601_v58 = vmul.f32 -1.442695, %v1052_v12 }
 0x4d6   :  { %v1738_v9 = vpop.eup %1737 }
 0x4d7   :  { %v1073_v13 = vadd.f32 1.0, %v1738_v9 }
 0x4d8   :  { %v1740_v15 = vpop.eup %1739 }
 0x4d9   :  { %1741 = vrcp.f32 %v1073_v13  ;;  %v1075_v60 = vadd.f32 1.0, %v1740_v15 }
 0x4db   :  { %1743 = vrcp.f32 %v1075_v60 }
 0x4dc   :  { %1745 = vpow2.f32 %v1599_v11 }
 0x4dd   :  { %1747 = vpow2.f32 %v1601_v58 }
 0x4e3   :  { %v1742_v6 = vpop.eup %1741 }
 0x4e4   :  { %v2732_v23 = vmul.f32 %v1742_v6, %v1049_v14  ;;  %v3309_v14 = vld [vmem:[#allocation10_spill] sm:$0xff] }
 0x4e5   :  { %v1744_v26 = vpop.eup %1743  ;;  %v1053_v44 = vadd.f32 %v1047_v48, %v3309_v14  ;;  %v1054_v10 = vadd.f32 %v1048_v43, %v3309_v14 }
 0x4e6   :  { %v2734_v9 = vmul.f32 %v1744_v26, %v1051_v8  ;;  %1097 = vrot.lane.b32.xlu1 %v2732_v23, %s1820_s13  ;;  %v1746_v6 = vpop.eup %1745 }
 0x4e7   :  { %v1748_v8 = vpop.eup %1747  ;;  %v1074_v60 = vadd.f32 1.0, %v1746_v6  ;;  %v1602_v0 = vmul.f32 -1.442695, %v1053_v44  ;;  %v1603_v52 = vmul.f32 -1.442695, %v1054_v10 }
 0x4e8   :  { %1099 = vrot.lane.b32.xlu0 %v2734_v9, %s1820_s13  ;;  %v1076_v13 = vadd.f32 1.0, %v1748_v8 }
 0x4e9   :  { %1749 = vrcp.f32 %v1074_v60 }
 0x4ea   :  { %1127 = vrot.lane.b32.xlu1 %v2732_v23, %s1822_s15  ;;  %1751 = vrcp.f32 %v1076_v13 }
 0x4eb   :  { %1753 = vpow2.f32 %v1602_v0 }
 0x4ec   :  { %1129 = vrot.lane.b32.xlu0 %v2734_v9, %s1822_s15  ;;  %1755 = vpow2.f32 %v1603_v52 }
 0x4ee   :  { %1157 = vrot.lane.b32.xlu1 %v2732_v23, %s1824_s17 }
 0x4f0   :  { %1159 = vrot.lane.b32.xlu0 %v2734_v9, %s1824_s17 }
 0x4f2   :  { %1187 = vrot.lane.b32.xlu1 %v2732_v23, %s1825_s18 }
 0x4f3   :  { %v1750_v46 = vpop.eup %1749 }
 0x4f4   :  { %1189 = vrot.lane.b32.xlu0 %v2734_v9, %s1825_s18  ;;  %v1752_v15 = vpop.eup %1751  ;;  %v2770_v63 = vmul.f32 %v1750_v46, %v1050_v53 }
 0x4f5   :  { %v2774_v33 = vmul.f32 %v1752_v15, %v1052_v12  ;;  %v1754_v53 = vpop.eup %1753 }
 0x4f6   :  { %1229 = vrot.lane.b32.xlu1 %v2732_v23, %s1819_s1  ;;  %v1756_v12 = vpop.eup %1755  ;;  %v1077_v11 = vadd.f32 1.0, %v1754_v53 }
 0x4f7   :  { %v1078_v58 = vadd.f32 1.0, %v1756_v12 }
 0x4f8   :  { %1231 = vrot.lane.b32.xlu0 %v2734_v9, %s1819_s1  ;;  %1757 = vrcp.f32 %v1077_v11 }
 0x4f9   :  { %1759 = vrcp.f32 %v1078_v58 }
 0x4fa   :  { %1259 = vrot.lane.b32.xlu1 %v2732_v23, %s1821_s14 }
 0x4fc   :  { %1261 = vrot.lane.b32.xlu0 %v2734_v9, %s1821_s14 }
 0x4fe   :  { %1289 = vrot.lane.b32.xlu1 %v2732_v23, %s1823_s16 }
 0x500   :  { %1291 = vrot.lane.b32.xlu0 %v2734_v9, %s1823_s16 }
 0x502   :  { %1319 = vrot.lane.b32.xlu1 %v2732_v23, %s1826_s19  ;;  %v1758_v26 = vpop.eup %1757 }
 0x503   :  { %v1760_v6 = vpop.eup %1759  ;;  %v2806_v8 = vmul.f32 %v1758_v26, %v1053_v44 }
 0x504   :  { %1321 = vrot.lane.b32.xlu0 %v2734_v9, %s1826_s19  ;;  %v2810_v60 = vmul.f32 %v1760_v6, %v1054_v10 }
 0x505   :  { %3310 = vst [vmem:[#allocation6_spill] sm:$0xff] %v2806_v8 }
 0x506   :  { %1103 = vrot.lane.b32.xlu1 %v2770_v63, %s1820_s13  ;;  %3311 = vst [vmem:[#allocation7_spill] sm:$0xff] %v2810_v60 }
 0x508   :  { %1105 = vrot.lane.b32.xlu0 %v2774_v33, %s1820_s13 }
 0x50a   :  { %1133 = vrot.lane.b32.xlu1 %v2770_v63, %s1822_s15 }
 0x50c   :  { %1135 = vrot.lane.b32.xlu0 %v2774_v33, %s1822_s15 }
 0x50e   :  { %1163 = vrot.lane.b32.xlu1 %v2770_v63, %s1824_s17 }
 0x510   :  { %1165 = vrot.lane.b32.xlu0 %v2774_v33, %s1824_s17 }
 0x512   :  { %1193 = vrot.lane.b32.xlu1 %v2770_v63, %s1825_s18 }
 0x514   :  { %1195 = vrot.lane.b32.xlu0 %v2774_v33, %s1825_s18 }
 0x516   :  { %1235 = vrot.lane.b32.xlu1 %v2770_v63, %s1819_s1 }
 0x518   :  { %1237 = vrot.lane.b32.xlu0 %v2774_v33, %s1819_s1 }
 0x51a   :  { %1265 = vrot.lane.b32.xlu1 %v2770_v63, %s1821_s14 }
 0x51c   :  { %1267 = vrot.lane.b32.xlu0 %v2774_v33, %s1821_s14 }
 0x51e   :  { %1295 = vrot.lane.b32.xlu1 %v2770_v63, %s1823_s16 }
 0x520   :  { %1297 = vrot.lane.b32.xlu0 %v2774_v33, %s1823_s16 }
 0x522   :  { %1325 = vrot.lane.b32.xlu1 %v2770_v63, %s1826_s19 }
 0x524   :  { %1327 = vrot.lane.b32.xlu0 %v2774_v33, %s1826_s19 }
 0x526   :  { %1101 = vrot.lane.b32.xlu1 %v2806_v8, %s1820_s13 }
 0x528   :  { %1107 = vrot.lane.b32.xlu0 %v2810_v60, %s1820_s13 }
 0x52a   :  { %1131 = vrot.lane.b32.xlu1 %v2806_v8, %s1822_s15 }
 0x52c   :  { %1137 = vrot.lane.b32.xlu0 %v2810_v60, %s1822_s15 }
 0x52e   :  { %1161 = vrot.lane.b32.xlu1 %v2806_v8, %s1824_s17 }
 0x530   :  { %1167 = vrot.lane.b32.xlu0 %v2810_v60, %s1824_s17 }
 0x532   :  { %1191 = vrot.lane.b32.xlu1 %v2806_v8, %s1825_s18 }
 0x534   :  { %1197 = vrot.lane.b32.xlu0 %v2810_v60, %s1825_s18 }
 0x536   :  { %1233 = vrot.lane.b32.xlu1 %v2806_v8, %s1819_s1 }
 0x538   :  { %1239 = vrot.lane.b32.xlu0 %v2810_v60, %s1819_s1 }
 0x53a   :  { %1263 = vrot.lane.b32.xlu1 %v2806_v8, %s1821_s14 }
 0x53c   :  { %1269 = vrot.lane.b32.xlu0 %v2810_v60, %s1821_s14 }
 0x53e   :  { %1293 = vrot.lane.b32.xlu1 %v2806_v8, %s1823_s16 }
 0x540   :  { %1299 = vrot.lane.b32.xlu0 %v2810_v60, %s1823_s16 }
 0x542   :  { %1323 = vrot.lane.b32.xlu1 %v2806_v8, %s1826_s19 }
 0x544   :  { %1329 = vrot.lane.b32.xlu0 %v2810_v60, %s1826_s19  ;;  %v3312_v60 = vld [vmem:[#allocation11_spill] sm:$0xff] }
 0x558   :  { %v1098_v13 = vpop.permute.xlu1 %1097 }
 0x55a   :  { %v1100_v19 = vpop.permute.xlu0 %1099 }
 0x55c   :  { %v1128_v48 = vpop.permute.xlu1 %1127 }
 0x55e   :  { %v1130_v43 = vpop.permute.xlu0 %1129 }
 0x560   :  { %v1158_v14 = vpop.permute.xlu1 %1157 }
 0x562   :  { %v1160_v44 = vpop.permute.xlu0 %1159 }
 0x564   :  { %v1188_v10 = vpop.permute.xlu1 %1187 }
 0x566   :  { %v1190_v46 = vpop.permute.xlu0 %1189 }
 0x568   :  { %v2844_v0 = vpop.permute.xlu1 %1229 }
 0x56a   :  { %v2846_v15 = vpop.permute.xlu0 %1231 }
 0x56c   :  { %v2848_v52 = vpop.permute.xlu1 %1259 }
 0x56e   :  { %v2850_v53 = vpop.permute.xlu0 %1261 }
 0x570   :  { %v2852_v12 = vpop.permute.xlu1 %1289 }
 0x572   :  { %v2854_v11 = vpop.permute.xlu0 %1291 }
 0x574   :  { %v2856_v58 = vpop.permute.xlu1 %1319 }
 0x576   :  { %v2858_v26 = vpop.permute.xlu0 %1321 }
 0x578   :  { %v1104_v6 = vpop.permute.xlu1 %1103 }
 0x579   :  { %v1109_v35 = vsel %vm337_vm11, %v1098_v13, %v1104_v6  ;;  %v1112_v28 = vsel %vm337_vm11, %v1104_v6, %v1098_v13 }
 0x57a   :  { %v1106_v36 = vpop.permute.xlu0 %1105  ;;  %v1115_v57 = vmul.f32 %v1112_v28, %v3313_v42 }
 0x57b   :  { %v1110_v22 = vsel %vm337_vm11, %v1100_v19, %v1106_v36  ;;  %v1113_v56 = vsel %vm337_vm11, %v1106_v36, %v1100_v19  ;;  %v3315_v19 = vld [vmem:[#allocation29_spill] sm:$0xff] }
 0x57c   :  { %v1134_v29 = vpop.permute.xlu1 %1133  ;;  %v1118_v42 = vmul.f32 %v1110_v22, %v2372_v18 }
 0x57d   :  { %v1139_v55 = vsel %vm386_vm9, %v1128_v48, %v1134_v29  ;;  %v1142_v3 = vsel %vm386_vm9, %v1134_v29, %v1128_v48 }
 0x57e   :  { %v1136_v20 = vpop.permute.xlu0 %1135  ;;  %v1145_v48 = vmul.f32 %v1142_v3, %v2206_v34  ;;  %v1146_v8 = vmul.f32 %v1139_v55, %v3312_v60  ;;  %v3316_v34 = vld [vmem:[#allocation30_spill] sm:$0xff] }
 0x57f   :  { %v1140_v25 = vsel %vm386_vm9, %v1130_v43, %v1136_v20  ;;  %v1143_v21 = vsel %vm386_vm9, %v1136_v20, %v1130_v43  ;;  %v3314_v20 = vld [vmem:[#allocation28_spill] sm:$0xff] }
 0x580   :  { %v1164_v29 = vpop.permute.xlu1 %1163  ;;  %v1116_v43 = vmul.f32 %v1109_v35, %v3314_v20  ;;  %v1147_v24 = vmul.f32 %v1143_v21, %v2368_v32  ;;  %v1148_v49 = vmul.f32 %v1140_v25, %v2022_v17  ;;  %v1151_v21 = vadd.f32 %v1145_v48, %v1115_v57 }
 0x581   :  { %v1169_v13 = vsel %vm435_vm13, %v1158_v14, %v1164_v29  ;;  %v1172_v6 = vsel %vm435_vm13, %v1164_v29, %v1158_v14  ;;  %v1117_v14 = vmul.f32 %v1113_v56, %v2358_v59 }
 0x582   :  { %v1166_v36 = vpop.permute.xlu0 %1165  ;;  %v1175_v4 = vmul.f32 %v1172_v6, %v3315_v19  ;;  %v1176_v3 = vmul.f32 %v1169_v13, %v3316_v34  ;;  %v1152_v25 = vadd.f32 %v1146_v8, %v1116_v43  ;;  %v1154_v6 = vadd.f32 %v1148_v49, %v1118_v42 }
 0x583   :  { %v1170_v55 = vsel %vm435_vm13, %v1160_v44, %v1166_v36  ;;  %v1173_v60 = vsel %vm435_vm13, %v1166_v36, %v1160_v44  ;;  %v1153_v13 = vadd.f32 %v1147_v24, %v1117_v14  ;;  %v1218_v36 = vmul.f32 %v2770_v63, %v2068_v38 }
 0x584   :  { %v1177_v28 = vmul.f32 %v1173_v60, %v2382_v16  ;;  %v1178_v32 = vmul.f32 %v1170_v55, %v2386_v27  ;;  %v1194_v17 = vpop.permute.xlu1 %1193  ;;  %v1181_v56 = vadd.f32 %v1175_v4, %v1151_v21  ;;  %v1182_v16 = vadd.f32 %v1176_v3, %v1152_v25 }
 0x585   :  { %v1199_v35 = vsel %vm484_vm14, %v1188_v10, %v1194_v17  ;;  %v1202_v29 = vsel %vm484_vm14, %v1194_v17, %v1188_v10  ;;  %v1217_v4 = vmul.f32 %v2732_v23, %v2068_v38  ;;  %v1220_v19 = vmul.f32 %v2774_v33, %v2089_v45  ;;  %v3317_v33 = vld [vmem:[#allocation31_spill] sm:$0xff] }
 0x586   :  { %v1205_v44 = vmul.f32 %v1202_v29, %v2247_v50  ;;  %v1206_v59 = vmul.f32 %v1199_v35, %v2251_v2  ;;  %v1196_v18 = vpop.permute.xlu0 %1195  ;;  %v1183_v22 = vadd.f32 %v1177_v28, %v1153_v13  ;;  %v1184_v8 = vadd.f32 %v1178_v32, %v1154_v6 }
 0x587   :  { %v1200_v27 = vsel %vm484_vm14, %v1190_v46, %v1196_v18  ;;  %v1203_v57 = vsel %vm484_vm14, %v1196_v18, %v1190_v46 }
 0x588   :  { %v1207_v48 = vmul.f32 %v1203_v57, %v2410_v40  ;;  %v1208_v24 = vmul.f32 %v1200_v27, %v2414_v1  ;;  %v1236_v49 = vpop.permute.xlu1 %1235  ;;  %v1211_v10 = vadd.f32 %v1205_v44, %v1181_v56  ;;  %v1212_v50 = vadd.f32 %v1206_v59, %v1182_v16 }
 0x589   :  { %v1241_v46 = vsel %vm557_vm3, %v2844_v0, %v1236_v49  ;;  %v1244_v40 = vsel %vm557_vm3, %v1236_v49, %v2844_v0  ;;  %v1219_v1 = vmul.f32 %v2734_v9, %v2089_v45 }
 0x58a   :  { %v1213_v20 = vadd.f32 %v1207_v48, %v1183_v22  ;;  %v1214_v2 = vadd.f32 %v1208_v24, %v1184_v8  ;;  %v1238_v43 = vpop.permute.xlu0 %1237  ;;  %v1223_v34 = vadd.f32 %v1217_v4, %v1211_v10  ;;  %v1224_v3 = vadd.f32 %v1218_v36, %v1212_v50 }
 0x58b   :  { %v1242_v23 = vsel %vm557_vm3, %v2846_v15, %v1238_v43  ;;  %v1245_v38 = vsel %vm557_vm3, %v1238_v43, %v2846_v15  ;;  %v1247_v45 = vmul.f32 %v1241_v46, %v2255_v41  ;;  %v1248_v55 = vmul.f32 %v1244_v40, %v3317_v33  ;;  %v3319_v41 = vld [vmem:[#allocation33_spill] sm:$0xff]  ;;  %v3321_v40 = vld [vmem:[#allocation35_spill] sm:$0xff] }
 0x58c   :  { %v1266_v63 = vpop.permute.xlu1 %1265  ;;  %v1225_v60 = vadd.f32 %v1219_v1, %v1213_v20  ;;  %v1226_v14 = vadd.f32 %v1220_v19, %v1214_v2  ;;  %v1249_v15 = vmul.f32 %v1242_v23, %v2426_v37  ;;  %v1250_v28 = vmul.f32 %v1245_v38, %v2430_v7  ;;  %v3322_v19 = vld [vmem:[#allocation23_spill] sm:$0xff] }
 0x58d   :  { %v1271_v0 = vsel %vm606_vm2, %v2848_v52, %v1266_v63  ;;  %v1274_v9 = vsel %vm606_vm2, %v1266_v63, %v2848_v52  ;;  %v3318_v52 = vld [vmem:[#allocation32_spill] sm:$0xff]  ;;  %v1253_v6 = vadd.f32 %v1247_v45, %v1223_v34  ;;  %v1254_v44 = vadd.f32 %v1248_v55, %v1224_v3 }
 0x58e   :  { %v1268_v42 = vpop.permute.xlu0 %1267  ;;  %v1277_v21 = vmul.f32 %v1271_v0, %v3318_v52  ;;  %v1278_v25 = vmul.f32 %v1274_v9, %v3319_v41  ;;  %v1255_v56 = vadd.f32 %v1249_v15, %v1225_v60  ;;  %v1256_v16 = vadd.f32 %v1250_v28, %v1226_v14  ;;  %v3323_v3 = vld [vmem:[#allocation24_spill] sm:$0xff] }
 0x58f   :  { %v1272_v32 = vsel %vm606_vm2, %v2850_v53, %v1268_v42  ;;  %v1275_v17 = vsel %vm606_vm2, %v1268_v42, %v2850_v53  ;;  %v3325_v14 = vld [vmem:[#allocation36_spill] sm:$0xff] }
 0x590   :  { %v1296_v35 = vpop.permute.xlu1 %1295  ;;  %v1279_v29 = vmul.f32 %v1272_v32, %v2434_v30  ;;  %v1280_v13 = vmul.f32 %v1275_v17, %v2438_v31  ;;  %v1283_v27 = vadd.f32 %v1277_v21, %v1253_v6  ;;  %v1284_v57 = vadd.f32 %v1278_v25, %v1254_v44 }
 0x591   :  { %v1301_v37 = vsel %vm655_vm4, %v2852_v12, %v1296_v35  ;;  %v1304_v7 = vsel %vm655_vm4, %v1296_v35, %v2852_v12 }
 0x592   :  { %v1307_v53 = vmul.f32 %v1301_v37, %v2116_v51  ;;  %v1308_v59 = vmul.f32 %v1304_v7, %v2322_v62  ;;  %v1298_v18 = vpop.permute.xlu0 %1297  ;;  %v1285_v8 = vadd.f32 %v1279_v29, %v1255_v56  ;;  %v1286_v62 = vadd.f32 %v1280_v13, %v1256_v16  ;;  %v3326_v29 = vld [vmem:[#allocation37_spill] sm:$0xff]  ;;  %v3329_v16 = vld [vmem:[#allocation14_spill] sm:$0xff] }
 0x593   :  { %v1302_v30 = vsel %vm655_vm4, %v2854_v11, %v1298_v18  ;;  %v1305_v31 = vsel %vm655_vm4, %v1298_v18, %v2854_v11  ;;  %v3328_v18 = vld [vmem:[#allocation13_spill] sm:$0xff] }
 0x594   :  { %v1309_v12 = vmul.f32 %v1302_v30, %v2102_v47  ;;  %v1310_v22 = vmul.f32 %v1305_v31, %v2458_v54  ;;  %v1326_v51 = vpop.permute.xlu1 %1325  ;;  %v1313_v49 = vadd.f32 %v1307_v53, %v1283_v27  ;;  %v1314_v10 = vadd.f32 %v1308_v59, %v1284_v57  ;;  %v3327_v53 = vld [vmem:[#allocation12_spill] sm:$0xff]  ;;  %v3330_v27 = vld [vmem:[#allocation38_spill] sm:$0xff] }
 0x595   :  { %v1331_v48 = vsel %vm704_vm5, %v2856_v58, %v1326_v51  ;;  %v1334_v24 = vsel %vm704_vm5, %v1326_v51, %v2856_v58  ;;  %v3320_v58 = vld [vmem:[#allocation34_spill] sm:$0xff] }
 0x596   :  { %v1337_v11 = vmul.f32 %v1331_v48, %v2338_v39  ;;  %v1338_v50 = vmul.f32 %v1334_v24, %v2342_v61  ;;  %v1328_v47 = vpop.permute.xlu0 %1327  ;;  %v1315_v20 = vadd.f32 %v1309_v12, %v1285_v8  ;;  %v1316_v54 = vadd.f32 %v1310_v22, %v1286_v62  ;;  %v3331_v22 = vld [vmem:[#allocation39_spill] sm:$0xff] }
 0x597   :  { %v1332_v2 = vsel %vm704_vm5, %v2858_v26, %v1328_v47  ;;  %v1335_v43 = vsel %vm704_vm5, %v1328_v47, %v2858_v26  ;;  %v3324_v26 = vld [vmem:[#allocation25_spill] sm:$0xff] }
 0x598   :  { %v1343_v4 = vadd.f32 %v1337_v11, %v1313_v49  ;;  %v1344_v36 = vadd.f32 %v1338_v50, %v1314_v10  ;;  %v1339_v46 = vmul.f32 %v1332_v2, %v3320_v58  ;;  %v1340_v1 = vmul.f32 %v1335_v43, %v3321_v40  ;;  %v1102_v39 = vpop.permute.xlu1 %1101  ;;  %v3332_v10 = vld [vmem:[#allocation17_spill] sm:$0xff]  ;;  %v3333_v50 = vld [vmem:[#allocation40_spill] sm:$0xff]  ;;  %v3335_v40 = vld [vmem:[#allocation6_spill] sm:$0xff] }
 0x59a   :  { %v1349_v61 = vmul.f32 %v1343_v4, %v3322_v19  ;;  %v1350_v23 = vmul.f32 %v1344_v36, %v3322_v19  ;;  %v1345_v38 = vadd.f32 %v1339_v46, %v1315_v20  ;;  %v1346_v63 = vadd.f32 %v1340_v1, %v1316_v54  ;;  %v1108_v34 = vpop.permute.xlu0 %1107  ;;  %v3334_v46 = vld [vmem:[#allocation16_spill] sm:$0xff] }
 0x59b   :  { %v1114_v25 = vsel %vm337_vm11, %v1108_v34, %v1102_v39  ;;  %v1111_v7 = vsel %vm337_vm11, %v1102_v39, %v1108_v34  ;;  %v1221_v1 = vmul.f32 %v3335_v40, %v3334_v46 }
 0x59c   :  { %v1351_v0 = vmul.f32 %v1345_v38, %v3323_v3  ;;  %v1352_v9 = vmul.f32 %v1346_v63, %v3323_v3  ;;  %v1132_v45 = vpop.permute.xlu1 %1131  ;;  %v2985_v33 = vadd.f32 %v1349_v61, %v3324_v26  ;;  %v2988_v55 = vadd.f32 %v1350_v23, %v3324_v26 }
 0x59d   :  { %v1119_v59 = vmul.f32 %v1114_v25, %v3327_v53  ;;  %v1120_v57 = vmul.f32 %v1111_v7, %v3330_v27 }
 0x59e   :  { %v1138_v60 = vpop.permute.xlu0 %1137  ;;  %v2991_v42 = vadd.f32 %v1351_v0, %v3325_v14  ;;  %v2994_v15 = vadd.f32 %v1352_v9, %v3325_v14  ;;  %v1604_v32 = vmul.f32 -1.442695, %v2985_v33  ;;  %v1605_v17 = vmul.f32 -1.442695, %v2988_v55  ;;  %v3336_v0 = vld [vmem:[#allocation7_spill] sm:$0xff] }
 0x59f   :  { %v1144_v28 = vsel %vm386_vm9, %v1138_v60, %v1132_v45  ;;  %v1141_v35 = vsel %vm386_vm9, %v1132_v45, %v1138_v60  ;;  %v1222_v9 = vmul.f32 %v3336_v0, %v3334_v46 }
 0x5a0   :  { %v1162_v52 = vpop.permute.xlu1 %1161  ;;  %v1606_v21 = vmul.f32 -1.442695, %v2991_v42  ;;  %v1607_v41 = vmul.f32 -1.442695, %v2994_v15  ;;  %1761 = vpow2.f32 %v1604_v32  ;;  %v1149_v13 = vmul.f32 %v1144_v28, %v3326_v29 }
 0x5a1   :  { %1763 = vpow2.f32 %v1605_v17  ;;  %v1150_v56 = vmul.f32 %v1141_v35, %v3328_v18  ;;  %v3337_v17 = vld [vmem:[#allocation20_spill] sm:$0xff]  ;;  %v3339_v35 = vld [vmem:[#allocation19_spill] sm:$0xff]  ;;  %v3341_v18 = vld [vmem:[#allocation21_spill] sm:$0xff] }
 0x5a2   :  { %v1168_v37 = vpop.permute.xlu0 %1167  ;;  %1765 = vpow2.f32 %v1606_v21  ;;  %v1155_v12 = vadd.f32 %v1149_v13, %v1119_v59  ;;  %v3338_v21 = vld [vmem:[#allocation41_spill] sm:$0xff]  ;;  %v3340_v13 = vld [vmem:[#allocation15_spill] sm:$0xff] }
 0x5a3   :  { %v1171_v6 = vsel %vm435_vm13, %v1162_v52, %v1168_v37  ;;  %v1174_v44 = vsel %vm435_vm13, %v1168_v37, %v1162_v52  ;;  %1767 = vpow2.f32 %v1607_v41  ;;  %v1156_v24 = vadd.f32 %v1150_v56, %v1120_v57 }
 0x5a4   :  { %v1179_v30 = vmul.f32 %v1174_v44, %v3329_v16  ;;  %v1192_v31 = vpop.permute.xlu1 %1191  ;;  %v1180_v51 = vmul.f32 %v1171_v6, %v3331_v22  ;;  %v3342_v16 = vld [vmem:[#allocation18_spill] sm:$0xff] }
 0x5a6   :  { %v1198_v8 = vpop.permute.xlu0 %1197  ;;  %v1185_v49 = vadd.f32 %v1179_v30, %v1155_v12  ;;  %v1186_v54 = vadd.f32 %v1180_v51, %v1156_v24 }
 0x5a7   :  { %v1201_v62 = vsel %vm484_vm14, %v1192_v31, %v1198_v8  ;;  %v1204_v48 = vsel %vm484_vm14, %v1198_v8, %v1192_v31 }
 0x5a8   :  { %v1209_v11 = vmul.f32 %v1204_v48, %v3332_v10  ;;  %v1210_v47 = vmul.f32 %v1201_v62, %v3333_v50  ;;  %v1234_v20 = vpop.permute.xlu1 %1233  ;;  %v3343_v48 = vld [vmem:[#allocation22_spill] sm:$0xff] }
 0x5aa   :  { %v1215_v2 = vadd.f32 %v1209_v11, %v1185_v49  ;;  %v1240_v43 = vpop.permute.xlu0 %1239  ;;  %v1762_v4 = vpop.eup %1761  ;;  %v1216_v58 = vadd.f32 %v1210_v47, %v1186_v54  ;;  %v3344_v49 = vld [vmem:[#allocation42_spill] sm:$0xff] }
 0x5ab   :  { %v1764_v36 = vpop.eup %1763  ;;  %v1243_v61 = vsel %vm557_vm3, %v1234_v20, %v1240_v43  ;;  %v1246_v23 = vsel %vm557_vm3, %v1240_v43, %v1234_v20  ;;  %v1379_v38 = vadd.f32 1.0, %v1762_v4 }
 0x5ac   :  { %v1264_v39 = vpop.permute.xlu1 %1263  ;;  %v1766_v19 = vpop.eup %1765  ;;  %v1380_v63 = vadd.f32 1.0, %v1764_v36  ;;  %v1227_v3 = vadd.f32 %v1221_v1, %v1215_v2  ;;  %v1228_v32 = vadd.f32 %v1222_v9, %v1216_v58  ;;  %v1251_v52 = vmul.f32 %v1243_v61, %v3337_v17 }
 0x5ad   :  { %v1768_v34 = vpop.eup %1767  ;;  %v1381_v26 = vadd.f32 1.0, %v1766_v19  ;;  %1769 = vrcp.f32 %v1379_v38  ;;  %v1252_v41 = vmul.f32 %v1246_v23, %v3338_v21 }
 0x5ae   :  { %v1270_v45 = vpop.permute.xlu0 %1269  ;;  %v1382_v28 = vadd.f32 1.0, %v1768_v34  ;;  %1771 = vrcp.f32 %v1380_v63  ;;  %v1257_v53 = vadd.f32 %v1251_v52, %v1227_v3  ;;  %v3348_v52 = vld [vmem:[#allocation44_spill] sm:$0xff] }
 0x5af   :  { %v1273_v60 = vsel %vm606_vm2, %v1264_v39, %v1270_v45  ;;  %v1276_v14 = vsel %vm606_vm2, %v1270_v45, %v1264_v39  ;;  %1773 = vrcp.f32 %v1381_v26  ;;  %v1258_v59 = vadd.f32 %v1252_v41, %v1228_v32  ;;  %v3347_v32 = vld [vmem:[#allocation45_spill] sm:$0xff] }
 0x5b0   :  { %v1294_v25 = vpop.permute.xlu1 %1293  ;;  %v1281_v29 = vmul.f32 %v1273_v60, %v3339_v35  ;;  %v1282_v37 = vmul.f32 %v1276_v14, %v3340_v13  ;;  %1775 = vrcp.f32 %v1382_v28  ;;  %v3349_v13 = vld [vmem:[#allocation46_spill] sm:$0xff] }
 0x5b2   :  { %v1300_v7 = vpop.permute.xlu0 %1299  ;;  %v1287_v31 = vadd.f32 %v1281_v29, %v1257_v53  ;;  %v1288_v27 = vadd.f32 %v1282_v37, %v1258_v59 }
 0x5b3   :  { %v1303_v6 = vsel %vm655_vm4, %v1294_v25, %v1300_v7  ;;  %v1306_v44 = vsel %vm655_vm4, %v1300_v7, %v1294_v25 }
 0x5b4   :  { %v1311_v56 = vmul.f32 %v1303_v6, %v3341_v18  ;;  %v1312_v30 = vmul.f32 %v1306_v44, %v3342_v16  ;;  %v1324_v57 = vpop.permute.xlu1 %1323 }
 0x5b6   :  { %v1330_v12 = vpop.permute.xlu0 %1329  ;;  %v1317_v8 = vadd.f32 %v1311_v56, %v1287_v31  ;;  %v1318_v62 = vadd.f32 %v1312_v30, %v1288_v27  ;;  %v3350_v31 = vld [vmem:[#allocation47_spill] sm:$0xff] }
 0x5b7   :  { %v1333_v22 = vsel %vm704_vm5, %v1324_v57, %v1330_v12  ;;  %v1336_v51 = vsel %vm704_vm5, %v1330_v12, %v1324_v57  ;;  %v1770_v11 = vpop.eup %1769 }
 0x5b8   :  { %v1341_v24 = vmul.f32 %v1333_v22, %v3343_v48  ;;  %v1342_v10 = vmul.f32 %v1336_v51, %v3344_v49  ;;  %v1772_v50 = vpop.eup %1771  ;;  %v3053_v54 = vmul.f32 %v1770_v11, %v2985_v33  ;;  %v3346_v33 = vld [vmem:[#allocation43_spill] sm:$0xff] }
 0x5b9   :  { %v1774_v2 = vpop.eup %1773  ;;  %v3056_v43 = vmul.f32 %v1772_v50, %v2988_v55 }
 0x5ba   :  { %v1347_v47 = vadd.f32 %v1341_v24, %v1317_v8  ;;  %v1348_v20 = vadd.f32 %v1342_v10, %v1318_v62  ;;  %v1776_v4 = vpop.eup %1775  ;;  %v3061_v46 = vmul.f32 %v1774_v2, %v2991_v42  ;;  %v3351_v62 = vld [vmem:[#allocation48_spill] sm:$0xff]  ;;  %v3354_v2 = vld [vmem:[#allocation50_spill] sm:$0xff] }
 0x5bb   :  { %v1403_v40 = vadd.f32 %v3056_v43, %v3053_v54  ;;  %v3066_v1 = vmul.f32 %v1776_v4, %v2994_v15  ;;  %v3352_v48 = vsub.s32 0, %v3351_v62  ;;  %v3362_v62 = vld [vmem:[#allocation53_spill] sm:$0xff] }
 0x5bc   :  { %v1353_v36 = vmul.f32 %v1347_v47, %v3345_v5  ;;  %v1354_v58 = vmul.f32 %v1348_v20, %v3345_v5  ;;  %v3353_v47 = vld [vmem:[#allocation49_spill] sm:$0xff]  ;;  %v3355_v5 = vld [vmem:[#allocation51_spill] sm:$0xff] }
 0x5bd   :  { %1404 = vadd.xlane.f32.xlu1 %v1403_v40  ;;  %v1406_v55 = vadd.f32 %v3066_v1, %v3061_v46 }
 0x5be   :  { %v1359_v39 = vadd.f32 %v1353_v36, %v3346_v33  ;;  %v1360_v19 = vadd.f32 %v1354_v58, %v3346_v33 }
 0x5bf   :  { %1407 = vadd.xlane.f32.xlu0 %v1406_v55 }
 0x5c0   :  { %v1608_v61 = vmul.f32 -1.442695, %v1359_v39  ;;  %v1609_v23 = vmul.f32 -1.442695, %v1360_v19 }
 0x5c2   :  { %1777 = vpow2.f32 %v1608_v61 }
 0x5c3   :  { %1779 = vpow2.f32 %v1609_v23 }
 0x5cc   :  { %v1778_v42 = vpop.eup %1777 }
 0x5cd   :  { %v1780_v38 = vpop.eup %1779  ;;  %v1383_v63 = vadd.f32 1.0, %v1778_v42 }
 0x5ce   :  { %v1384_v34 = vadd.f32 1.0, %v1780_v38 }
 0x5cf   :  { %1781 = vrcp.f32 %v1383_v63 }
 0x5d0   :  { %1783 = vrcp.f32 %v1384_v34  ;;  %v29_v34 = vld [vmem:[%s3137_s4] sm:$0xff] }
 0x5d9   :  { %v1782_v15 = vpop.eup %1781 }
 0x5da   :  { %v1784_v3 = vpop.eup %1783  ;;  %v3072_v0 = vmul.f32 %v1782_v15, %v1359_v39 }
 0x5db   :  { %v3074_v9 = vmul.f32 %v1784_v3, %v1360_v19  ;;  %v3356_v3 = vmov 0  }
 0x5dd   :  { %v1409_v45 = vadd.f32 %v3074_v9, %v3072_v0 }
 0x5df   :  { %1410 = vadd.xlane.f32.xlu0 %v1409_v45  ;;  %v3357_v45 = vmov 1  }
 0x64a   :  { %v1405_v60 = vpop.xlane.xlu1 %1404 }
 0x64b   :  { %v1412_v28 = vmul.f32 0.00390625, %v1405_v60 }
 0x64c   :  { %v1408_v26 = vpop.xlane.xlu0 %1407 }
 0x64d   :  { %v1413_v14 = vmul.f32 0.00390625, %v1408_v26  ;;  %v1415_v21 = vmul.f32 %v3348_v52, %v1412_v28  ;;  %v3358_v26 = vmov 15  }
 0x64f   :  { %v1416_v17 = vmul.f32 %v3347_v32, %v1413_v14  ;;  %v1418_v29 = vsel %vm816_vm6, %v1415_v21, 0.0 }
 0x651   :  { %v1419_v25 = vsel %vm816_vm6, %v1416_v17, 0.0 }
 0x652   :  { %v1420_v7 = vadd.f32 %v1419_v25, %v1418_v29 }
 0x66c   :  { %v1411_v41 = vpop.xlane.xlu0 %1410 }
 0x66d   :  { %v1414_v35 = vmul.f32 0.00390625, %v1411_v41 }
 0x66f   :  { %v1417_v37 = vmul.f32 %v3349_v13, %v1414_v35 }
 0x671   :  { %v1421_v6 = vsel %vm816_vm6, %v1417_v37, 0.0 }
 0x672   :  { %v1422_v44 = vadd.f32 %v1421_v6, %v1420_v7  ;;  %v3359_v6 = vld [vmem:[#allocation3_spill] sm:$0xff] }
 0x674   :  { %v1423_v53 = vrot.slane %v1422_v44, 4 }
 0x676   :  { %v1424_v59 = vadd.f32 %v1423_v53, %v1422_v44  ;;  %v3360_v44 = vld [vmem:[#allocation4_spill] sm:$0xff] }
 0x678   :  { %v1425_v18 = vrot.slane %v1424_v59, 2 }
 0x67a   :  { %v1426_v56 = vadd.f32 %v1425_v18, %v1424_v59  ;;  %v1805_v18 = vld [vmem:[%s3132_s0 + $0x8] sm:$0xff] }
 0x67c   :  { %v1427_v16 = vrot.slane %v1426_v56, 1 }
 0x67e   :  { %v1428_v30 = vadd.f32 %v1427_v16, %v1426_v56  ;;  %v3361_v16 = vld [vmem:[#allocation54_spill] sm:$0xff] }
 0x680   :  { %v1429_v27 = vadd.f32 %v1428_v30, %v3350_v31 }
 0x682   :  { %v1610_v57 = vmul.f32 -1.442695, %v1429_v27 }
 0x684   :  { %1785 = vpow2.f32 %v1610_v57 }
 0x68e   :  { %v1786_v12 = vpop.eup %1785 }
 0x68f   :  { %v1433_v22 = vadd.f32 1.0, %v1786_v12 }
 0x691   :  { %1787 = vrcp.f32 %v1433_v22 }
 0x69b   :  { %v1788_v51 = vpop.eup %1787 }
 0x69c   :  { %v1436_v8 = vmul.f32 %v1788_v51, %v1429_v27 }
 0x69e   :  { %v1440_v24 = vrot.slane %v1436_v8, %v3352_v48 }
 0x6a0   :  { %1442 = vrot.lane.b32.xlu1 %v1440_v24, %s1825_s18  ;;  %v3363_v24 = vld [vmem:[#allocation52_spill] sm:$0xff] }
 0x712   :  { %v1443_v49 = vpop.permute.xlu1 %1442 }
 0x713   :  { %v1445_v10 = vmul.f32 %v3348_v52, %v1443_v49  ;;  %v1446_v11 = vmul.f32 %v3347_v32, %v1443_v49  ;;  %v1447_v50 = vmul.f32 %v3349_v13, %v1443_v49 }
 0x715   :  { %v1451_v20 = vadd.f32 %v1445_v10, %v3353_v47  ;;  %v1452_v4 = vadd.f32 %v1446_v11, %v3354_v2  ;;  %v1453_v36 = vadd.f32 %v1447_v50, %v3355_v5 }
 0x717   :  { %v1611_v58 = vmul.f32 -1.442695, %v1451_v20  ;;  %v1612_v40 = vmul.f32 -1.442695, %v1452_v4  ;;  %v1613_v33 = vmul.f32 -1.442695, %v1453_v36 }
 0x719   :  { %1789 = vpow2.f32 %v1611_v58 }
 0x71a   :  { %1791 = vpow2.f32 %v1612_v40 }
 0x71b   :  { %1793 = vpow2.f32 %v1613_v33 }
 0x723   :  { %v1790_v39 = vpop.eup %1789 }
 0x724   :  { %v1792_v19 = vpop.eup %1791  ;;  %v1463_v55 = vadd.f32 1.0, %v1790_v39 }
 0x725   :  { %v1794_v61 = vpop.eup %1793  ;;  %v1464_v23 = vadd.f32 1.0, %v1792_v19 }
 0x726   :  { %1795 = vrcp.f32 %v1463_v55  ;;  %v1465_v42 = vadd.f32 1.0, %v1794_v61 }
 0x727   :  { %1797 = vrcp.f32 %v1464_v23 }
 0x728   :  { %1799 = vrcp.f32 %v1465_v42 }
 0x730   :  { %v1796_v38 = vpop.eup %1795 }
 0x731   :  { %v1798_v63 = vpop.eup %1797  ;;  %1474 = vperm.xlu0 %1669, %v1796_v38  }
 0x732   :  { %1479 = vperm.xlu1 %1668, %v1798_v63   ;;  %v1800_v15 = vpop.eup %1799 }
 0x735   :  { %1670 = vset.pattern.permute.xlu0 %v3356_v3 }
 0x736   :  { %1484 = vperm.xlu1 %1668, %v1800_v15   ;;  %966 = vperm.xlu0 %1670, %v29_v34  }
 0x73a   :  { %1671 = vset.pattern.permute.xlu1 %v3357_v45  ;;  %1672 = vset.pattern.permute.xlu0 %v3358_v26 }
 0x73b   :  { %972 = vperm.xlu1 %1671, %v29_v34  }
 0x7b0   :  { %v1475_v60 = vpop.permute.xlu0 %1474 }
 0x7b1   :  { %v1480_v14 = vpop.permute.xlu1 %1479  ;;  %v1487_v28 = vmul.f32 %v1475_v60, %v3053_v54  ;;  %v1488_v32 = vmul.f32 %v1475_v60, %v3056_v43 }
 0x7b2   :  { %v1489_v17 = vmul.f32 %v1480_v14, %v3061_v46  ;;  %v1490_v52 = vmul.f32 %v1480_v14, %v3066_v1 }
 0x7b4   :  { %v1493_v21 = vpack.c.bf16 %v1489_v17, %v1487_v28  ;;  %v1494_v41 = vpack.c.bf16 %v1490_v52, %v1488_v32 }
 0x7b5   :  { %v1485_v25 = vpop.permute.xlu1 %1484  ;;  %v967_v13 = vpop.permute.xlu0 %966 }
 0x7b6   :  { %v1491_v35 = vmul.f32 %v1485_v25, %v3072_v0  ;;  %v1492_v29 = vmul.f32 %v1485_v25, %v3074_v9  ;;  %1503 = vmatprep.subr.bf16.mxu0 %v1494_v41  ;;  %v969_v54 = vmul.f32 %v967_v13, %v3359_v6  ;;  %v970_v43 = vmul.f32 %v967_v13, %v3360_v44  ;;  %v1804_v0 = vld [vmem:[%s3132_s0] sm:$0xff] }
 0x7b7   :  { %1504 = vmatpush1.bf16.msra.mxu0 %v1493_v21 }
 0x7b8   :  { %v1495_v37 = vpack.c.bf16 %v1491_v35, %v1491_v35  ;;  %v1496_v7 = vpack.c.bf16 %v1492_v29, %v1492_v29 }
 0x7ba   :  { %v973_v53 = vpop.permute.xlu1 %972  ;;  %1614 = vmatprep.subr.msk.bf16.mxu0 %vm168_vm0, %v1496_v7  ;;  %v1498_v46 = vsel %vm168_vm0, %v1495_v37, 0 }
 0x7bb   :  { %v975_v1 = vadd.f32 %v973_v53, %v969_v54  ;;  %v976_v59 = vadd.f32 %v973_v53, %v970_v43  ;;  %1506 = vmatpush1.bf16.msra.mxu0 %v1498_v46 }
 0x7bd   :  { %v977_v9 = vadd.f32 %v1804_v0, %v975_v1  ;;  %v978_v56 = vadd.f32 %v1805_v18, %v976_v59 }
 0x7be   :  { %1615 = vmatmul.mubr.msk.bf16.vlgmr.msra.gmra.mrb[8].mxu0 %vm913_vm7, %v3361_v16 }
 0x7bf   :  { %979 = vst [vmem:[%s3138_s6] sm:$0xff] %v977_v9  ;;  %980 = vst [vmem:[%s3138_s6 + $0x8] sm:$0xff] %v978_v56 }
 0x891   :  { %v1537_v30 = vpop.f32.mrb[8].mxu0 }
 0x892   :  { %v1544_v31 = vmul.f32 %v1537_v30, %v967_v13  ;;  %v1539_v27 = vpop.f32.mrb[9].mxu0 }
 0x893   :  { %v1545_v57 = vmul.f32 %v1539_v27, %v967_v13  ;;  %v1541_v12 = vpop.f32.mrb[10].mxu0 }
 0x894   :  { %v1546_v22 = vadd.f32 %v1544_v31, %v973_v53  ;;  %v1542_v51 = vpop.f32.mrb[11].mxu0 }
 0x895   :  { %v1547_v8 = vadd.f32 %v1545_v57, %v973_v53 }
 0x896   :  { %v1548_v48 = vadd.f32 %v3362_v62, %v1546_v22 }
 0x897   :  { %v1549_v49 = vadd.f32 %v3363_v24, %v1547_v8 }
 0x898   :  { %1616 = vst [vmem:[%s3138_s6 + $0x10] sm:$0xff] %v1548_v48 }
 0x899   :  { %1617 = vst [vmem:[%s3138_s6 + $0x18] sm:$0xff] %v1549_v49 }

</bundles_post_ra>
